<compile_context>
chip_gen: v5e
topology: v5e:2x2
jax: 0.10.0
libtpu: 0.0.40
codegen_flags: <defaults>
</compile_context>

<pallas_src>
import math
import jax
import jax.numpy as jnp
from jax.experimental import pallas as pl
from jax.experimental.pallas import tpu as pltpu

N_OBSERVATIONS = 246     # implied by the commented `x.view(-1, 1, 246)`
N_ACTIONS = 3641
HIDDEN = 128


def _cdiv(a, b):
    return -(-a // b)


def dqn_kernel(x_ref,
               w1_ref, b1_ref,
               w2_ref, b2_ref,
               w3_ref, b3_ref,
               w4_ref, b4_ref,
               w5_ref, b5_ref,
               out_ref):
    # Hidden-stack weights (~0.2 MB bf16) have a constant block index, so they
    # stay VMEM-resident across the whole grid; only x tiles and output tiles
    # stream.  Matmul inputs are bf16 (MXU-native), accumulation / bias / relu
    # stay f32.
    h = x_ref[...].astype(jnp.bfloat16)                       # fused f32->bf16 cast
    h = jnp.dot(h, w1_ref[...], preferred_element_type=jnp.float32) + b1_ref[...]
    h = jnp.maximum(h, 0.0).astype(jnp.bfloat16)
    h = jnp.dot(h, w2_ref[...], preferred_element_type=jnp.float32) + b2_ref[...]
    h = jnp.maximum(h, 0.0).astype(jnp.bfloat16)
    h = jnp.dot(h, w3_ref[...], preferred_element_type=jnp.float32) + b3_ref[...]
    h = jnp.maximum(h, 0.0).astype(jnp.bfloat16)
    h = jnp.dot(h, w4_ref[...], preferred_element_type=jnp.float32) + b4_ref[...]
    h = jnp.maximum(h, 0.0).astype(jnp.bfloat16)
    out = jnp.dot(h, w5_ref[...], preferred_element_type=jnp.float32) + b5_ref[...]
    out_ref[...] = out.astype(out_ref.dtype)


def prepare_params(params):
    """One-time preprocessing (call ONCE, not per forward): cast weights bf16.

    No padding is needed anywhere: Mosaic handles the ragged K=246 contraction
    and the ragged N=3641 output dimension directly.
    """
    # TODO(synk): for small-batch serving, quantize w5 to fp8 (v7x) / int8
    # (v5e/v6e) here with per-output-channel scales to halve the dominant
    # weight-load bytes.
    bf16 = lambda w: w.astype(jnp.bfloat16)
    return tuple((bf16(w), b.astype(jnp.float32)) for (w, b) in params)


def _device_kind():
    try:
        return jax.devices()[0].device_kind.lower()
    except Exception:
        return ""


def _pick_batch_tile(B, cap, force_two_tiles_min=None):
    """Choose (TM, Bp) minimizing row padding (perf-review item on mid-size B)."""
    if B <= cap:
        n_tiles = 1
        if force_two_tiles_min is not None and B >= force_two_tiles_min:
            n_tiles = 2                      # v7x: give each TensorCore a batch tile
    else:
        n_tiles = _cdiv(B, cap)
    if n_tiles == 1:
        return B, B                          # full-extent block: zero padding, zero slice
    tm = 8 * _cdiv(_cdiv(B, n_tiles), 8)
    bp = tm * _cdiv(B, tm)
    return tm, bp


def dqn_forward(x, prepared, *, out_dtype=jnp.float32, max_rows_per_tile=None):
    """x: (B, N_OBSERVATIONS) f32, prepared = prepare_params(...).
    Returns (B, N_ACTIONS) in `out_dtype` (f32 default; bf16 halves writeback)."""
    B = x.shape[0]
    (w1, b1), (w2, b2), (w3, b3), (w4, b4), (w5, b5) = prepared

    if max_rows_per_tile is None:
        kind = _device_kind()
        cap = 128 if "v5" in kind else 256           # v5e: 128x128 MXU, 1 vst slot
        two_tiles_min = 16 if "v7" in kind else None  # v7x: 2 TensorCores per chip
    else:
        cap = max(8, max_rows_per_tile)
        two_tiles_min = None
    TM, Bp = _pick_batch_tile(B, cap, two_tiles_min)

    # Row padding only when the batch is actually tiled; cheap (a few KB).
    if Bp != B:
        xp = jnp.zeros((Bp, N_OBSERVATIONS), x.dtype).at[:B, :].set(x)
    else:
        xp = x   # no wrapper op at all in the common / small-batch case

    n_tiles = Bp // TM
    out_itemsize = jnp.dtype(out_dtype).itemsize
    weight_bytes = (2 * (N_OBSERVATIONS * HIDDEN + 3 * HIDDEN * HIDDEN
                         + HIDDEN * N_ACTIONS)
                    + 4 * (4 * HIDDEN + N_ACTIONS))
    cost = pl.CostEstimate(
        flops=2 * Bp * (N_OBSERVATIONS * HIDDEN + 3 * HIDDEN * HIDDEN
                        + HIDDEN * N_ACTIONS),
        transcendentals=0,
        bytes_accessed=(Bp * N_OBSERVATIONS * 4 + weight_bytes
                        + Bp * N_ACTIONS * out_itemsize),
    )

    resident = lambda i: (0, 0)   # constant block index -> stays in VMEM

    out = pl.pallas_call(
        dqn_kernel,
        out_shape=jax.ShapeDtypeStruct((Bp, N_ACTIONS), out_dtype),
        grid=(n_tiles,),
        in_specs=[
            pl.BlockSpec((TM, N_OBSERVATIONS), lambda i: (i, 0)),
            pl.BlockSpec((N_OBSERVATIONS, HIDDEN), resident),
            pl.BlockSpec((1, HIDDEN), resident),
            pl.BlockSpec((HIDDEN, HIDDEN), resident),
            pl.BlockSpec((1, HIDDEN), resident),
            pl.BlockSpec((HIDDEN, HIDDEN), resident),
            pl.BlockSpec((1, HIDDEN), resident),
            pl.BlockSpec((HIDDEN, HIDDEN), resident),
            pl.BlockSpec((1, HIDDEN), resident),
            pl.BlockSpec((HIDDEN, N_ACTIONS), resident),
            pl.BlockSpec((1, N_ACTIONS), resident),
        ],
        out_specs=pl.BlockSpec((TM, N_ACTIONS), lambda i: (i, 0)),
        compiler_params=pltpu.CompilerParams(
            dimension_semantics=("parallel",),
            vmem_limit_bytes=32 << 20,
        ),
        cost_estimate=cost,
    )(xp, w1, b1, w2, b2, w3, b3, w4, b4, w5, b5)

    # TODO(synk): if only an action argmax is needed downstream, fuse it into
    # the kernel (per-tile argmax over the 3641 Q-values) so the kernel writes
    # B int32s instead of a (B, 3641) slab.
    if Bp != B:
        out = out[:B]
    return out


def init_params(key):
    """Deterministic init mimicking torch.nn.Linear default U[-1/sqrt(fan_in), +]."""
    dims = [(N_OBSERVATIONS, HIDDEN),
            (HIDDEN, HIDDEN),
            (HIDDEN, HIDDEN),
            (HIDDEN, HIDDEN),
            (HIDDEN, N_ACTIONS)]
    params = []
    for (fan_in, fan_out) in dims:
        key, kw, kb = jax.random.split(key, 3)
        bound = 1.0 / math.sqrt(fan_in)
        w = jax.random.uniform(kw, (fan_in, fan_out), jnp.float32, -bound, bound)
        b = jax.random.uniform(kb, (1, fan_out), jnp.float32, -bound, bound)
        params.append((w, b))
    return params


def ref_forward_f32(x, params):
    """Pure-f32 reference matching the PyTorch forward exactly."""
    h = x
    for i, (w, b) in enumerate(params):
        h = h @ w + b
        if i < 4:
            h = jnp.maximum(h, 0.0)
    return h


def ref_forward_bf16(x, prepared):
    """Pure-JAX reference mirroring the kernel's bf16-in / f32-accum precision."""
    h = x.astype(jnp.bfloat16)
    params = list(prepared)
    for (w, b) in params[:4]:
        h = jnp.dot(h, w, preferred_element_type=jnp.float32) + b
        h = jnp.maximum(h, 0.0).astype(jnp.bfloat16)
    w5, b5 = params[4]
    return jnp.dot(h, w5, preferred_element_type=jnp.float32) + b5


if __name__ == "__main__":
    key = jax.random.PRNGKey(0)
    key, kx = jax.random.split(key)

    batch = 2
    x = jax.random.normal(kx, (batch, N_OBSERVATIONS), jnp.float32)
    params = init_params(key)
    prepared = prepare_params(params)   # one-time bf16 cast

    # --- primary path: small batch, single full-extent tile, f32 output ---
    out = dqn_forward(x, prepared)
    out = jax.block_until_ready(out)
    assert out.shape == (batch, N_ACTIONS), out.shape
    assert out.dtype == jnp.float32

    ref_mirror = ref_forward_bf16(x, prepared)   # precision-mirrored reference
    assert jnp.allclose(out, ref_mirror, atol=1e-2, rtol=1e-2)
    ref_f32 = ref_forward_f32(x, params)         # exact PyTorch-semantics reference
    assert jnp.allclose(out, ref_f32, atol=5e-2, rtol=5e-2)

    # --- exercise the tiled / row-padded path (forced small tile cap) ---
    key, kx2 = jax.random.split(key)
    x2 = jax.random.normal(kx2, (12, N_OBSERVATIONS), jnp.float32)
    out2 = jax.block_until_ready(dqn_forward(x2, prepared, max_rows_per_tile=8))
    assert out2.shape == (12, N_ACTIONS)
    assert jnp.allclose(out2, ref_forward_bf16(x2, prepared), atol=1e-2, rtol=1e-2)

    # --- bf16 output option (halves output writeback; for argmax consumers) ---
    out_bf16 = jax.block_until_ready(dqn_forward(x, prepared, out_dtype=jnp.bfloat16))
    assert out_bf16.dtype == jnp.bfloat16
    assert jnp.allclose(out_bf16.astype(jnp.float32), ref_mirror, atol=5e-2, rtol=5e-2)

    print("KERNEL_OK")
</pallas_src>

<mosaic_0001>
module attributes {stable_mosaic.version = 11 : i64} {
  func.func @dqn_kernel(%arg0: i32, %arg1: memref<2x246xf32, #tpu.memory_space<vmem>>, %arg2: memref<246x128xbf16, #tpu.memory_space<vmem>>, %arg3: memref<1x128xf32, #tpu.memory_space<vmem>>, %arg4: memref<128x128xbf16, #tpu.memory_space<vmem>>, %arg5: memref<1x128xf32, #tpu.memory_space<vmem>>, %arg6: memref<128x128xbf16, #tpu.memory_space<vmem>>, %arg7: memref<1x128xf32, #tpu.memory_space<vmem>>, %arg8: memref<128x128xbf16, #tpu.memory_space<vmem>>, %arg9: memref<1x128xf32, #tpu.memory_space<vmem>>, %arg10: memref<128x3641xbf16, #tpu.memory_space<vmem>>, %arg11: memref<1x3641xf32, #tpu.memory_space<vmem>>, %arg12: memref<2x3641xf32, #tpu.memory_space<vmem>>) attributes {dimension_semantics = [#tpu.dimension_semantics<parallel>], iteration_bounds = array<i64: 1>, scalar_prefetch = 0 : i64, scratch_operands = 0 : i64, tpu.core_type = #tpu.core_type<tc>, window_params = [{transform_indices = @transform_0, window_bounds = array<i64: 2, 246>}, {pipeline_mode = #tpu.pipeline_mode<synchronous>, transform_indices = @transform_1, window_bounds = array<i64: 246, 128>}, {pipeline_mode = #tpu.pipeline_mode<synchronous>, transform_indices = @transform_2, window_bounds = array<i64: 1, 128>}, {pipeline_mode = #tpu.pipeline_mode<synchronous>, transform_indices = @transform_3, window_bounds = array<i64: 128, 128>}, {pipeline_mode = #tpu.pipeline_mode<synchronous>, transform_indices = @transform_4, window_bounds = array<i64: 1, 128>}, {pipeline_mode = #tpu.pipeline_mode<synchronous>, transform_indices = @transform_5, window_bounds = array<i64: 128, 128>}, {pipeline_mode = #tpu.pipeline_mode<synchronous>, transform_indices = @transform_6, window_bounds = array<i64: 1, 128>}, {pipeline_mode = #tpu.pipeline_mode<synchronous>, transform_indices = @transform_7, window_bounds = array<i64: 128, 128>}, {pipeline_mode = #tpu.pipeline_mode<synchronous>, transform_indices = @transform_8, window_bounds = array<i64: 1, 128>}, {pipeline_mode = #tpu.pipeline_mode<synchronous>, transform_indices = @transform_9, window_bounds = array<i64: 128, 3641>}, {pipeline_mode = #tpu.pipeline_mode<synchronous>, transform_indices = @transform_10, window_bounds = array<i64: 1, 3641>}, {transform_indices = @transform_11, window_bounds = array<i64: 2, 3641>}]} {
    %c0 = arith.constant 0 : index
    %c0_0 = arith.constant 0 : index
    %0 = vector.load %arg1[%c0, %c0_0] : memref<2x246xf32, #tpu.memory_space<vmem>>, vector<2x246xf32>
    %1 = arith.truncf %0 : vector<2x246xf32> to vector<2x246xbf16>
    %c0_1 = arith.constant 0 : index
    %c0_2 = arith.constant 0 : index
    %2 = vector.load %arg2[%c0_1, %c0_2] : memref<246x128xbf16, #tpu.memory_space<vmem>>, vector<246x128xbf16>
    %cst = arith.constant dense<0.000000e+00> : vector<2x128xf32>
    %3 = tpu.matmul %1, %2, %cst {dimension_numbers = #tpu.dot_dimension_numbers<[1], [0], [0], [1], [0, 0, 1, 1], [], []>} : vector<2x246xbf16>, vector<246x128xbf16>, vector<2x128xf32> -> vector<2x128xf32>
    %c0_3 = arith.constant 0 : index
    %c0_4 = arith.constant 0 : index
    %4 = vector.load %arg3[%c0_3, %c0_4] : memref<1x128xf32, #tpu.memory_space<vmem>>, vector<1x128xf32>
    %5 = vector.broadcast %4 : vector<1x128xf32> to vector<2x128xf32>
    %6 = arith.addf %3, %5 : vector<2x128xf32>
    %cst_5 = arith.constant 0.000000e+00 : f32
    %7 = vector.broadcast %cst_5 : f32 to vector<2x128xf32>
    %8 = arith.maximumf %6, %7 : vector<2x128xf32>
    %9 = arith.truncf %8 : vector<2x128xf32> to vector<2x128xbf16>
    %c0_6 = arith.constant 0 : index
    %c0_7 = arith.constant 0 : index
    %10 = vector.load %arg4[%c0_6, %c0_7] : memref<128x128xbf16, #tpu.memory_space<vmem>>, vector<128x128xbf16>
    %cst_8 = arith.constant dense<0.000000e+00> : vector<2x128xf32>
    %11 = tpu.matmul %9, %10, %cst_8 {dimension_numbers = #tpu.dot_dimension_numbers<[1], [0], [0], [1], [0, 0, 1, 1], [], []>} : vector<2x128xbf16>, vector<128x128xbf16>, vector<2x128xf32> -> vector<2x128xf32>
    %c0_9 = arith.constant 0 : index
    %c0_10 = arith.constant 0 : index
    %12 = vector.load %arg5[%c0_9, %c0_10] : memref<1x128xf32, #tpu.memory_space<vmem>>, vector<1x128xf32>
    %13 = vector.broadcast %12 : vector<1x128xf32> to vector<2x128xf32>
    %14 = arith.addf %11, %13 : vector<2x128xf32>
    %cst_11 = arith.constant 0.000000e+00 : f32
    %15 = vector.broadcast %cst_11 : f32 to vector<2x128xf32>
    %16 = arith.maximumf %14, %15 : vector<2x128xf32>
    %17 = arith.truncf %16 : vector<2x128xf32> to vector<2x128xbf16>
    %c0_12 = arith.constant 0 : index
    %c0_13 = arith.constant 0 : index
    %18 = vector.load %arg6[%c0_12, %c0_13] : memref<128x128xbf16, #tpu.memory_space<vmem>>, vector<128x128xbf16>
    %cst_14 = arith.constant dense<0.000000e+00> : vector<2x128xf32>
    %19 = tpu.matmul %17, %18, %cst_14 {dimension_numbers = #tpu.dot_dimension_numbers<[1], [0], [0], [1], [0, 0, 1, 1], [], []>} : vector<2x128xbf16>, vector<128x128xbf16>, vector<2x128xf32> -> vector<2x128xf32>
    %c0_15 = arith.constant 0 : index
    %c0_16 = arith.constant 0 : index
    %20 = vector.load %arg7[%c0_15, %c0_16] : memref<1x128xf32, #tpu.memory_space<vmem>>, vector<1x128xf32>
    %21 = vector.broadcast %20 : vector<1x128xf32> to vector<2x128xf32>
    %22 = arith.addf %19, %21 : vector<2x128xf32>
    %cst_17 = arith.constant 0.000000e+00 : f32
    %23 = vector.broadcast %cst_17 : f32 to vector<2x128xf32>
    %24 = arith.maximumf %22, %23 : vector<2x128xf32>
    %25 = arith.truncf %24 : vector<2x128xf32> to vector<2x128xbf16>
    %c0_18 = arith.constant 0 : index
    %c0_19 = arith.constant 0 : index
    %26 = vector.load %arg8[%c0_18, %c0_19] : memref<128x128xbf16, #tpu.memory_space<vmem>>, vector<128x128xbf16>
    %cst_20 = arith.constant dense<0.000000e+00> : vector<2x128xf32>
    %27 = tpu.matmul %25, %26, %cst_20 {dimension_numbers = #tpu.dot_dimension_numbers<[1], [0], [0], [1], [0, 0, 1, 1], [], []>} : vector<2x128xbf16>, vector<128x128xbf16>, vector<2x128xf32> -> vector<2x128xf32>
    %c0_21 = arith.constant 0 : index
    %c0_22 = arith.constant 0 : index
    %28 = vector.load %arg9[%c0_21, %c0_22] : memref<1x128xf32, #tpu.memory_space<vmem>>, vector<1x128xf32>
    %29 = vector.broadcast %28 : vector<1x128xf32> to vector<2x128xf32>
    %30 = arith.addf %27, %29 : vector<2x128xf32>
    %cst_23 = arith.constant 0.000000e+00 : f32
    %31 = vector.broadcast %cst_23 : f32 to vector<2x128xf32>
    %32 = arith.maximumf %30, %31 : vector<2x128xf32>
    %33 = arith.truncf %32 : vector<2x128xf32> to vector<2x128xbf16>
    %c0_24 = arith.constant 0 : index
    %c0_25 = arith.constant 0 : index
    %34 = vector.load %arg10[%c0_24, %c0_25] : memref<128x3641xbf16, #tpu.memory_space<vmem>>, vector<128x3641xbf16>
    %cst_26 = arith.constant dense<0.000000e+00> : vector<2x3641xf32>
    %35 = tpu.matmul %33, %34, %cst_26 {dimension_numbers = #tpu.dot_dimension_numbers<[1], [0], [0], [1], [0, 0, 1, 1], [], []>} : vector<2x128xbf16>, vector<128x3641xbf16>, vector<2x3641xf32> -> vector<2x3641xf32>
    %c0_27 = arith.constant 0 : index
    %c0_28 = arith.constant 0 : index
    %36 = vector.load %arg11[%c0_27, %c0_28] : memref<1x3641xf32, #tpu.memory_space<vmem>>, vector<1x3641xf32>
    %37 = vector.broadcast %36 : vector<1x3641xf32> to vector<2x3641xf32>
    %38 = arith.addf %35, %37 : vector<2x3641xf32>
    %c0_29 = arith.constant 0 : index
    %c0_30 = arith.constant 0 : index
    %39 = vector.load %arg12[%c0_29, %c0_30] : memref<2x3641xf32, #tpu.memory_space<vmem>>, vector<2x3641xf32>
    tpu.vector_store %arg12[%c0_29, %c0_30], %38 {strides = array<i32>} : memref<2x3641xf32, #tpu.memory_space<vmem>>, vector<2x3641xf32>,
    return
  }
  func.func @transform_0(%arg0: i32) -> (i32, i32) {
    %c0_i32 = arith.constant 0 : i32
    %c0_i32_0 = arith.constant 0 : i32
    return %arg0, %c0_i32 : i32, i32
  }
  func.func @transform_1(%arg0: i32) -> (i32, i32) {
    %c0_i32 = arith.constant 0 : i32
    %c0_i32_0 = arith.constant 0 : i32
    %c0_i32_1 = arith.constant 0 : i32
    return %c0_i32, %c0_i32_0 : i32, i32
  }
  func.func @transform_2(%arg0: i32) -> (i32, i32) {
    %c0_i32 = arith.constant 0 : i32
    %c0_i32_0 = arith.constant 0 : i32
    %c0_i32_1 = arith.constant 0 : i32
    return %c0_i32, %c0_i32_0 : i32, i32
  }
  func.func @transform_3(%arg0: i32) -> (i32, i32) {
    %c0_i32 = arith.constant 0 : i32
    %c0_i32_0 = arith.constant 0 : i32
    %c0_i32_1 = arith.constant 0 : i32
    return %c0_i32, %c0_i32_0 : i32, i32
  }
  func.func @transform_4(%arg0: i32) -> (i32, i32) {
    %c0_i32 = arith.constant 0 : i32
    %c0_i32_0 = arith.constant 0 : i32
    %c0_i32_1 = arith.constant 0 : i32
    return %c0_i32, %c0_i32_0 : i32, i32
  }
  func.func @transform_5(%arg0: i32) -> (i32, i32) {
    %c0_i32 = arith.constant 0 : i32
    %c0_i32_0 = arith.constant 0 : i32
    %c0_i32_1 = arith.constant 0 : i32
    return %c0_i32, %c0_i32_0 : i32, i32
  }
  func.func @transform_6(%arg0: i32) -> (i32, i32) {
    %c0_i32 = arith.constant 0 : i32
    %c0_i32_0 = arith.constant 0 : i32
    %c0_i32_1 = arith.constant 0 : i32
    return %c0_i32, %c0_i32_0 : i32, i32
  }
  func.func @transform_7(%arg0: i32) -> (i32, i32) {
    %c0_i32 = arith.constant 0 : i32
    %c0_i32_0 = arith.constant 0 : i32
    %c0_i32_1 = arith.constant 0 : i32
    return %c0_i32, %c0_i32_0 : i32, i32
  }
  func.func @transform_8(%arg0: i32) -> (i32, i32) {
    %c0_i32 = arith.constant 0 : i32
    %c0_i32_0 = arith.constant 0 : i32
    %c0_i32_1 = arith.constant 0 : i32
    return %c0_i32, %c0_i32_0 : i32, i32
  }
  func.func @transform_9(%arg0: i32) -> (i32, i32) {
    %c0_i32 = arith.constant 0 : i32
    %c0_i32_0 = arith.constant 0 : i32
    %c0_i32_1 = arith.constant 0 : i32
    return %c0_i32, %c0_i32_0 : i32, i32
  }
  func.func @transform_10(%arg0: i32) -> (i32, i32) {
    %c0_i32 = arith.constant 0 : i32
    %c0_i32_0 = arith.constant 0 : i32
    %c0_i32_1 = arith.constant 0 : i32
    return %c0_i32, %c0_i32_0 : i32, i32
  }
  func.func @transform_11(%arg0: i32) -> (i32, i32) {
    %c0_i32 = arith.constant 0 : i32
    %c0_i32_0 = arith.constant 0 : i32
    return %arg0, %c0_i32 : i32, i32
  }
}

</mosaic_0001>

<bundles_post_ra>
// kernel: tpu_custom_call.1
= control target key start
LH: loop header
LB: loop body
LE: loop exit
PB: predicated region body
PF: predicated region fallthrough
CT: control target
= control target key end

     0   :  { %vm180_vm0 = vcmask 1042432   ;;  %s5469_s0 = inlined_call_operand.vmem [shape: f32[2,246], index: 0, kind: input, shape index: {}]   ;;  %s5470_s1 = inlined_call_operand.vmem [shape: bf16[246,128], index: 1, kind: input, shape index: {}]   ;;  %s5471_s2 = inlined_call_operand.vmem [shape: f32[1,128], index: 2, kind: input, shape index: {}]   ;;  %s5472_s3 = inlined_call_operand.vmem [shape: bf16[128,128], index: 3, kind: input, shape index: {}]   ;;  %s5473_s4 = inlined_call_operand.vmem [shape: f32[1,128], index: 4, kind: input, shape index: {}]   ;;  %s5474_s5 = inlined_call_operand.vmem [shape: bf16[128,128], index: 5, kind: input, shape index: {}]   ;;  %s5475_s6 = inlined_call_operand.vmem [shape: f32[1,128], index: 6, kind: input, shape index: {}]   ;;  %s5476_s7 = inlined_call_operand.vmem [shape: bf16[128,128], index: 7, kind: input, shape index: {}]   ;;  %s5477_s8 = inlined_call_operand.vmem [shape: f32[1,128], index: 8, kind: input, shape index: {}]   ;;  %s5478_s9 = inlined_call_operand.vmem [shape: bf16[128,3641], index: 9, kind: input, shape index: {}]   ;;  %s5479_s10 = inlined_call_operand.vmem [shape: f32[1,3641], index: 10, kind: input, shape index: {}]   ;;  %s5480_s11 = inlined_call_operand.hbm [shape: f32[2,3641], index: 11, kind: output, shape index: {}]  }
   0x1   :  { %v3509_v0 = vld [vmem:[%s5470_s1 + $0x38] sm:$0xff]  ;;  %v3508_v3 = vld [vmem:[%s5470_s1 + $0x30] sm:$0xff]  ;;  %v39_v6 = vld [vmem:[%s5469_s0] sm:$0xf] }
   0x2   :  { %v78_v1 = vld [vmem:[%s5470_s1 + $0x78] sm:$0x7]  ;;  %184 = vmatpush.bf16.msra.mxu0 %v3509_v0  ;;  %v3516_v8 = vld [vmem:[%s5470_s1 + $0x70] sm:$0xff]  ;;  %v3507_v9 = vld [vmem:[%s5470_s1 + $0x28] sm:$0xff]  ;;  %41 = vst [vmem:[#allocation1] ss:$4 sm:$0xff] %v39_v6 }
   0x3   :  { %v144_v2 = vunpack.c.l.b16 %v78_v1  ;;  %v3524_v7 = vld [vmem:[%s5472_s3 + $0x38] sm:$0xff]  ;;  %v3523_v10 = vld [vmem:[%s5472_s3 + $0x30] sm:$0xff] }
   0x4   :  { %280 = vmatpush.bf16.msra.mxu2 %v3524_v7 }
   0x5   :  { %v160_v4 = vpack.c.b16 %v144_v2, %v144_v2 }
   0x6   :  { %185 = vmatpush.bf16.msra.mxu0 %v3508_v3 }
   0x7   :  { %v182_v5 = vsel %vm180_vm0, %v160_v4, 0 }
   0x8   :  { %197 = vmatpush.bf16.msra.mxu1 %v182_v5 }
   0x9   :  { %16 = vsyncpa [#allocation3], 0  ;;  %v3515_v11 = vld [vmem:[%s5470_s1 + $0x68] sm:$0xff]  ;;  %v3506_v12 = vld [vmem:[%s5470_s1 + $0x20] sm:$0xff]  ;;  %281 = vmatpush.bf16.msra.mxu2 %v3523_v10  ;;  %vm176_vm1 = vcmask 965632   ;;  %vm2361_vm2 = vcmask 1041408  }
   0xa   :  { %186 = vmatpush.bf16.msra.mxu0 %v3507_v9  ;;  %v3522_v13 = vld [vmem:[%s5472_s3 + $0x28] sm:$0xff]  ;;  %v3514_v14 = vld [vmem:[%s5470_s1 + $0x60] sm:$0xff]  ;;  %v3505_v15 = vld [vmem:[%s5470_s1 + $0x18] sm:$0xff]  ;;  %vm2363_vm3 = vcmask 1045508   ;;  %vm2365_vm4 = vcmask 1043456   ;;  %vm2399_vm5 = vcmask 459776  }
   0xb   :  { %v3521_v16 = vld [vmem:[%s5472_s3 + $0x20] sm:$0xff]  ;;  %v3513_v17 = vld [vmem:[%s5470_s1 + $0x58] sm:$0xff]  ;;  %v3504_v18 = vld [vmem:[%s5470_s1 + $0x10] sm:$0xff] }
   0xc   :  { %198 = vmatpush.bf16.msra.mxu1 %v3516_v8  ;;  %v3520_v19 = vld [vmem:[%s5472_s3 + $0x18] sm:$0xff]  ;;  %v3512_v20 = vld [vmem:[%s5470_s1 + $0x50] sm:$0xff]  ;;  %v3503_v21 = vld [vmem:[%s5470_s1 + $0x8] sm:$0xff] }
   0xd   :  { %282 = vmatpush.bf16.msra.mxu2 %v3522_v13  ;;  %v3519_v22 = vld [vmem:[%s5472_s3 + $0x10] sm:$0xff]  ;;  %v3511_v23 = vld [vmem:[%s5470_s1 + $0x48] sm:$0xff]  ;;  %v3502_v24 = vld [vmem:[%s5470_s1] sm:$0xff] }
   0xe   :  { %187 = vmatpush.bf16.msra.mxu0 %v3506_v12  ;;  %v42_v25 = vld.sshfl [vmem:[#allocation1] sm:$0xff pattern:$0x73625140]  ;;  %v43_v28 = vld.sshfl [vmem:[#allocation1 + $0x8] sm:$0xff pattern:$0x73625140] }
   0xf   :  { %v46_v26 = vpack.c.bf16 %v42_v25, %v42_v25  ;;  %v3510_v27 = vld [vmem:[%s5470_s1 + $0x40] sm:$0xff]  ;;  %v47_v29 = vpack.c.bf16 %v43_v28, %v43_v28  ;;  %v3518_v30 = vld [vmem:[%s5472_s3 + $0x8] sm:$0xff]  ;;  %v3532_v32 = vld [vmem:[%s5474_s5 + $0x38] sm:$0xff] }
  0x10   :  { %199 = vmatpush.bf16.msra.mxu1 %v3515_v11  ;;  %v3517_v31 = vld [vmem:[%s5472_s3] sm:$0xff]  ;;  %363 = vmatpush.bf16.msra.mxu3 %v3532_v32  ;;  %v3531_v33 = vld [vmem:[%s5474_s5 + $0x30] sm:$0xff]  ;;  %v3530_v34 = vld [vmem:[%s5474_s5 + $0x28] sm:$0xff] }
  0x11   :  { %283 = vmatpush.bf16.msra.mxu2 %v3521_v16  ;;  %v3529_v35 = vld [vmem:[%s5474_s5 + $0x20] sm:$0xff]  ;;  %v3528_v36 = vld [vmem:[%s5474_s5 + $0x18] sm:$0xff]  ;;  %v3527_v38 = vld [vmem:[%s5474_s5 + $0x10] sm:$0xff] }
  0x12   :  { %188 = vmatpush.bf16.msra.mxu0 %v3505_v15  ;;  %v3774_v37 = vld [vmem:[%s5471_s2] ss:$0 sm:$0xff]  ;;  %v3526_v47 = vld [vmem:[%s5474_s5 + $0x8] sm:$0xff]  ;;  %v3540_v49 = vld [vmem:[%s5476_s7 + $0x38] sm:$0xff] }
  0x13   :  { %v3525_v48 = vld [vmem:[%s5474_s5] sm:$0xff]  ;;  %v3539_v50 = vld [vmem:[%s5476_s7 + $0x30] sm:$0xff]  ;;  %v3538_v51 = vld [vmem:[%s5476_s7 + $0x28] sm:$0xff] }
  0x14   :  { %200 = vmatpush.bf16.msra.mxu1 %v3514_v14  ;;  %364 = vmatpush.bf16.msra.mxu3 %v3531_v33  ;;  %v3537_v52 = vld [vmem:[%s5476_s7 + $0x20] sm:$0xff]  ;;  %v3536_v53 = vld [vmem:[%s5476_s7 + $0x18] sm:$0xff]  ;;  %v3535_v54 = vld [vmem:[%s5476_s7 + $0x10] sm:$0xff] }
  0x15   :  { %284 = vmatpush.bf16.msra.mxu2 %v3520_v19  ;;  %v3775_v55 = vld [vmem:[%s5473_s4] ss:$0 sm:$0xff]  ;;  %v3534_v61 = vld [vmem:[%s5476_s7 + $0x8] sm:$0xff]  ;;  %v3388_v63 = vld [vmem:[%s5478_s9 + $0x658] sm:$0xf]  ;;  %s2408_s4 = sshll.u32 %s5480_s11, 4  ;;  %s2409_s4 = int_to_ptr.hbm [resolvable:$true] %s2408_s4 }
  0x16   :  { %189 = vmatpush.bf16.msra.mxu0 %v3504_v18  ;;  %v3533_v62 = vld [vmem:[%s5476_s7] sm:$0xff]  ;;  %v3758_v0 = vld [vmem:[%s5478_s9 + $0x6c8] sm:$0xf0]  ;;  %v3744_v1 = vld [vmem:[%s5478_s9 + $0x65c] sm:$0xf] }
  0x17   :  { %v3389_v2 = vor.u32 %v3758_v0, %v3388_v63  ;;  %v3390_v3 = vld [vmem:[%s5478_s9 + $0x6cc] sm:$0xf0]  ;;  %v3396_v4 = vld [vmem:[%s5478_s9 + $0x660] sm:$0xf]  ;;  %v3759_v5 = vld [vmem:[%s5478_s9 + $0x6d0] sm:$0xf0] }
  0x18   :  { %201 = vmatpush.bf16.msra.mxu1 %v3513_v17  ;;  %365 = vmatpush.bf16.msra.mxu3 %v3530_v34  ;;  %v3393_v6 = vor.u32 %v3744_v1, %v3390_v3  ;;  %v3397_v7 = vor.u32 %v3759_v5, %v3396_v4  ;;  %v3745_v8 = vld [vmem:[%s5478_s9 + $0x664] sm:$0xf]  ;;  %v3398_v9 = vld [vmem:[%s5478_s9 + $0x6d4] sm:$0xf0]  ;;  %v3272_v10 = vld [vmem:[%s5478_s9 + $0x570] sm:$0xf] }
  0x19   :  { %285 = vmatpush.bf16.msra.mxu2 %v3519_v22  ;;  %v3401_v11 = vor.u32 %v3745_v8, %v3398_v9  ;;  %v3729_v12 = vld [vmem:[%s5478_s9 + $0x5e0] sm:$0xf0]  ;;  %v3715_v13 = vld [vmem:[%s5478_s9 + $0x574] sm:$0xf]  ;;  %v3274_v14 = vld [vmem:[%s5478_s9 + $0x5e4] sm:$0xf0] }
  0x1a   :  { %190 = vmatpush.bf16.msra.mxu0 %v3503_v21  ;;  %v3273_v15 = vor.u32 %v3729_v12, %v3272_v10  ;;  %v3277_v16 = vor.u32 %v3715_v13, %v3274_v14  ;;  %v3280_v17 = vld [vmem:[%s5478_s9 + $0x578] sm:$0xf]  ;;  %v3730_v18 = vld [vmem:[%s5478_s9 + $0x5e8] sm:$0xf0]  ;;  %v3716_v19 = vld [vmem:[%s5478_s9 + $0x57c] sm:$0xf] }
  0x1b   :  { %v3282_v21 = vld [vmem:[%s5478_s9 + $0x5ec] sm:$0xf0]  ;;  %v3156_v22 = vld [vmem:[%s5478_s9 + $0x488] sm:$0xf]  ;;  %v3686_v25 = vld [vmem:[%s5478_s9 + $0x48c] sm:$0xf] }
  0x1c   :  { %202 = vmatpush.bf16.msra.mxu1 %v3512_v20  ;;  %366 = vmatpush.bf16.msra.mxu3 %v3529_v35  ;;  %v3281_v20 = vor.u32 %v3730_v18, %v3280_v17  ;;  %v3040_v34 = vld [vmem:[%s5478_s9 + $0x3a0] sm:$0xf]  ;;  %v3671_v35 = vld [vmem:[%s5478_s9 + $0x410] sm:$0xf0]  ;;  %v2816_v63 = vld [vmem:[%s5478_s9 + $0x1d8] sm:$0xf] }
  0x1d   :  { %286 = vmatpush.bf16.msra.mxu2 %v3518_v30  ;;  %v3687_v30 = vld [vmem:[%s5478_s9 + $0x494] sm:$0xf]  ;;  %v3614_v0 = vld [vmem:[%s5478_s9 + $0x248] sm:$0xf0]  ;;  %v3600_v1 = vld [vmem:[%s5478_s9 + $0x1dc] sm:$0xf] }
  0x1e   :  { %191 = vmatpush.bf16.msra.mxu0 %v3502_v24  ;;  %v3285_v24 = vor.u32 %v3716_v19, %v3282_v21  ;;  %v3776_v3 = vld [vmem:[%s5475_s6] ss:$0 sm:$0xff]  ;;  %v3584_v8 = vld [vmem:[%s5478_s9 + $0x158] sm:$0xf0]  ;;  %v3570_v9 = vld [vmem:[%s5478_s9 + $0xec] sm:$0xf] }
  0x1f   :  { %v2700_v12 = vld [vmem:[%s5478_s9 + $0xf0] sm:$0xf]  ;;  %v3585_v13 = vld [vmem:[%s5478_s9 + $0x160] sm:$0xf0]  ;;  %v3571_v14 = vld [vmem:[%s5478_s9 + $0xf4] sm:$0xf] }
  0x20   :  { %203 = vmatpush.bf16.msra.mxu1 %v3511_v23  ;;  %367 = vmatpush.bf16.msra.mxu3 %v3528_v36  ;;  %v3700_v23 = vld [vmem:[%s5478_s9 + $0x4f8] sm:$0xf0]  ;;  %v3657_v36 = vld [vmem:[%s5478_s9 + $0x3a4] sm:$0xf]  ;;  %v2576_v17 = vld [vmem:[%s5478_s9] sm:$0xf] }
  0x21   :  { %192 = vmatmul.bf16.vlgmr.msra.gmra.mxu0 %v46_v26  ;;  %287 = vmatpush.bf16.msra.mxu2 %v3517_v31  ;;  %v3158_v26 = vld [vmem:[%s5478_s9 + $0x4fc] sm:$0xf0]  ;;  %v3157_v28 = vor.u32 %v3700_v23, %v3156_v22  ;;  %v3166_v31 = vld [vmem:[%s5478_s9 + $0x504] sm:$0xf0]  ;;  %v3555_v18 = vld [vmem:[%s5478_s9 + $0x70] sm:$0xf0]  ;;  %v2701_v22 = vor.u32 %v3585_v13, %v2700_v12 }
  0x22   :  { %446 = vmatpush.bf16.msrb.mxu0 %v3540_v49  ;;  %v3161_v32 = vor.u32 %v3686_v25, %v3158_v26  ;;  %v3541_v19 = vld [vmem:[%s5478_s9 + $0x4] sm:$0xf]  ;;  %v2578_v23 = vld [vmem:[%s5478_s9 + $0x74] sm:$0xf0]  ;;  %v3556_v25 = vld [vmem:[%s5478_s9 + $0x78] sm:$0xf0] }
  0x23   :  { %v3058_v12 = vld [vmem:[%s5478_s9 + $0x424] sm:$0xf0]  ;;  %v3064_v13 = vld [vmem:[%s5478_s9 + $0x3b8] sm:$0xf] }
  0x24   :  { %204 = vmatpush.bf16.msra.mxu1 %v3510_v27  ;;  %368 = vmatpush.bf16.msra.mxu3 %v3527_v38  ;;  %v3164_v27 = vld [vmem:[%s5478_s9 + $0x490] sm:$0xf]  ;;  %v3042_v38 = vld [vmem:[%s5478_s9 + $0x414] sm:$0xf0] }
  0x25   :  { %1948 = vmatpush.bf16.msrb.mxu2 %v3393_v6  ;;  %v2817_v6 = vor.u32 %v3614_v0, %v2816_v63  ;;  %v3174_v0 = vld [vmem:[%s5478_s9 + $0x50c] sm:$0xf0] }
  0x26   :  { %447 = vmatpush.bf16.msrb.mxu0 %v3539_v50  ;;  %v2926_v50 = vld [vmem:[%s5478_s9 + $0x32c] sm:$0xf0] }
  0x27   :  { %2477 = vmatmul.msk.bf16.vlgmr.msra.gmra.mxu1 %vm176_vm1, %v47_v29  ;;  %v3701_v29 = vld [vmem:[%s5478_s9 + $0x500] sm:$0xf0] }
  0x28   :  { %369 = vmatpush.bf16.msra.mxu3 %v3526_v47  ;;  %1935 = vmatpush.bf16.msrb.mxu1 %v3389_v2  ;;  %v3165_v33 = vor.u32 %v3701_v29, %v3164_v27  ;;  %v3642_v47 = vld [vmem:[%s5478_s9 + $0x328] sm:$0xf0]  ;;  %v2818_v2 = vld [vmem:[%s5478_s9 + $0x24c] sm:$0xf0]  ;;  %v2586_v29 = vld [vmem:[%s5478_s9 + $0x7c] sm:$0xf0] }
  0x29   :  { %1949 = vmatpush.bf16.msrb.mxu2 %v3277_v16  ;;  %v2821_v10 = vor.u32 %v3600_v1, %v2818_v2  ;;  %v3180_v1 = vld [vmem:[%s5478_s9 + $0x4a0] sm:$0xf]  ;;  %v3703_v2 = vld [vmem:[%s5478_s9 + $0x510] sm:$0xf0] }
  0x2a   :  { %448 = vmatpush.bf16.msrb.mxu0 %v3538_v51  ;;  %v2932_v51 = vld [vmem:[%s5478_s9 + $0x2c0] sm:$0xf] }
  0x2c   :  { %370 = vmatpush.bf16.msra.mxu3 %v3525_v48  ;;  %1936 = vmatpush.bf16.msrb.mxu1 %v3273_v15  ;;  %v3628_v48 = vld [vmem:[%s5478_s9 + $0x2bc] sm:$0xf]  ;;  %v2702_v15 = vld [vmem:[%s5478_s9 + $0x164] sm:$0xf0] }
  0x2d   :  { %1950 = vmatpush.bf16.msrb.mxu2 %v3161_v32  ;;  %v2705_v27 = vor.u32 %v3571_v14, %v2702_v15  ;;  %v3746_v32 = vld [vmem:[%s5478_s9 + $0x66c] sm:$0xf]  ;;  %v3660_v15 = vld [vmem:[%s5478_s9 + $0x3bc] sm:$0xf] }
  0x2e   :  { %449 = vmatpush.bf16.msrb.mxu0 %v3537_v52  ;;  %v3643_v52 = vld [vmem:[%s5478_s9 + $0x330] sm:$0xf0]  ;;  %v3674_v14 = vld [vmem:[%s5478_s9 + $0x428] sm:$0xf0] }
  0x30   :  { %1961 = vmatpush.bf16.msrb.mxu3 %v3397_v7  ;;  %1937 = vmatpush.bf16.msrb.mxu1 %v3157_v28  ;;  %v2692_v7 = vld [vmem:[%s5478_s9 + $0xe8] sm:$0xf]  ;;  %v3542_v28 = vld [vmem:[%s5478_s9 + $0xc] sm:$0xf] }
  0x31   :  { %v2693_v16 = vor.u32 %v3584_v8, %v2692_v7  ;;  %v3181_v7 = vor.u32 %v3703_v2, %v3180_v1  ;;  %v3056_v8 = vld [vmem:[%s5478_s9 + $0x3b0] sm:$0xf]  ;;  %v3544_v2 = vld [vmem:[%s5478_s9 + $0x1c] sm:$0xf] }
  0x32   :  { %450 = vmatpush.bf16.msrb.mxu0 %v3536_v53  ;;  %v3629_v53 = vld [vmem:[%s5478_s9 + $0x2c4] sm:$0xf] }
  0x34   :  { %1962 = vmatpush.bf16.msrb.mxu3 %v3281_v20 }
  0x36   :  { %451 = vmatpush.bf16.msrb.mxu0 %v3535_v54  ;;  %v2934_v54 = vld [vmem:[%s5478_s9 + $0x334] sm:$0xf0] }
  0x38   :  { %1963 = vmatpush.bf16.msrb.mxu3 %v3165_v33  ;;  %v3406_v33 = vld [vmem:[%s5478_s9 + $0x6dc] sm:$0xf0] }
  0x3a   :  { %452 = vmatpush.bf16.msrb.mxu0 %v3534_v61  ;;  %v2937_v61 = vor.u32 %v3629_v53, %v2934_v54  ;;  %v3732_v53 = vld [vmem:[%s5478_s9 + $0x5f8] sm:$0xf0] }
  0x3e   :  { %453 = vmatpush.bf16.msrb.mxu0 %v3533_v62  ;;  %v2810_v62 = vld [vmem:[%s5478_s9 + $0x244] sm:$0xf0] }
  0x42   :  { %1974 = vmatpush.bf16.msra.mxu0 %v3401_v11  ;;  %v2694_v11 = vld [vmem:[%s5478_s9 + $0x15c] sm:$0xf0] }
  0x43   :  { %v2697_v21 = vor.u32 %v3570_v9, %v2694_v11  ;;  %v3673_v9 = vld [vmem:[%s5478_s9 + $0x420] sm:$0xf0] }
  0x46   :  { %1975 = vmatpush.bf16.msra.mxu0 %v3285_v24  ;;  %v2584_v24 = vld [vmem:[%s5478_s9 + $0x8] sm:$0xf] }
  0x9e   :  { %v193_v39 = vpop.f32.mrf.mxu0 }
  0x9f   :  { %v194_v40 = vadd.f32 %v3774_v37, %v193_v39  ;;  %v3169_v37 = vor.u32 %v3687_v30, %v3166_v31  ;;  %v3048_v39 = vld [vmem:[%s5478_s9 + $0x3a8] sm:$0xf]  ;;  %v3760_v31 = vld [vmem:[%s5478_s9 + $0x6d8] sm:$0xf0] }
  0xa0   :  { %v3404_v30 = vld [vmem:[%s5478_s9 + $0x668] sm:$0xf] }
  0xa1   :  { %1976 = vmatpush.bf16.msra.mxu0 %v3169_v37  ;;  %v3761_v37 = vld [vmem:[%s5478_s9 + $0x6e0] sm:$0xf0] }
  0xa4   :  { %v206_v41 = vpop.f32.mrf.mxu1 }
  0xa5   :  { %v207_v42 = vadd.f32 %v206_v41, %v194_v40  ;;  %v3672_v40 = vld [vmem:[%s5478_s9 + $0x418] sm:$0xf0]  ;;  %v3658_v41 = vld [vmem:[%s5478_s9 + $0x3ac] sm:$0xf] }
  0xa6   :  { %v195_v44 = vpop.f32.mrf.mxu0 }
  0xa7   :  { %v210_v43 = vmax.f32 %v207_v42, 0.0  ;;  %v3050_v42 = vld [vmem:[%s5478_s9 + $0x41c] sm:$0xf0]  ;;  %v3045_v44 = vor.u32 %v3657_v36, %v3042_v38  ;;  %v3412_v36 = vld [vmem:[%s5478_s9 + $0x670] sm:$0xf]  ;;  %v2581_v38 = vor.u32 %v3541_v19, %v2578_v23  ;;  %v3065_v19 = vor.u32 %v3674_v14, %v3064_v13 }
  0xa8   :  { %v3053_v49 = vor.u32 %v3658_v41, %v3050_v42  ;;  %v3414_v41 = vld [vmem:[%s5478_s9 + $0x6e4] sm:$0xf0]  ;;  %v3763_v13 = vld [vmem:[%s5478_s9 + $0x6f0] sm:$0xf0] }
  0xa9   :  { %v211_v45 = vpack.c.bf16 %v210_v43, %v210_v43  ;;  %v3041_v43 = vor.u32 %v3671_v35, %v3040_v34  ;;  %1951 = vmatpush.bf16.msrb.mxu2 %v3045_v44  ;;  %v2577_v35 = vor.u32 %v3555_v18, %v2576_v17  ;;  %v3405_v44 = vor.u32 %v3760_v31, %v3404_v30 }
  0xaa   :  { %1977 = vmatpush.bf16.msra.mxu0 %v3053_v49  ;;  %v3717_v49 = vld [vmem:[%s5478_s9 + $0x584] sm:$0xf]  ;;  %v3057_v17 = vor.u32 %v3673_v9, %v3056_v8  ;;  %v3420_v8 = vld [vmem:[%s5478_s9 + $0x678] sm:$0xf]  ;;  %v3762_v9 = vld [vmem:[%s5478_s9 + $0x6e8] sm:$0xf0] }
  0xab   :  { %288 = vmatmul.bf16.vlgmr.msra.gmra.mxu2 %v211_v45  ;;  %v3049_v45 = vor.u32 %v3672_v40, %v3048_v39  ;;  %1938 = vmatpush.bf16.msrb.mxu1 %v3041_v43  ;;  %v2585_v39 = vor.u32 %v3556_v25, %v2584_v24  ;;  %v3747_v40 = vld [vmem:[%s5478_s9 + $0x674] sm:$0xf]  ;;  %v2589_v43 = vor.u32 %v3542_v28, %v2586_v29  ;;  %v2942_v24 = vld [vmem:[%s5478_s9 + $0x33c] sm:$0xf0]  ;;  %v2948_v25 = vld [vmem:[%s5478_s9 + $0x2d0] sm:$0xf] }
  0xac   :  { %v208_v46 = vpop.f32.mrf.mxu1  ;;  %v2950_v28 = vld [vmem:[%s5478_s9 + $0x344] sm:$0xf0] }
  0xad   :  { %v2924_v46 = vld [vmem:[%s5478_s9 + $0x2b8] sm:$0xf]  ;;  %1964 = vmatpush.bf16.msrb.mxu3 %v3049_v45  ;;  %v3409_v45 = vor.u32 %v3746_v32, %v3406_v33  ;;  %v2824_v32 = vld [vmem:[%s5478_s9 + $0x1e0] sm:$0xf]  ;;  %v3615_v33 = vld [vmem:[%s5478_s9 + $0x250] sm:$0xf0] }
  0xae   :  { %1978 = vmatpush.bf16.msra.mxu0 %v2937_v61  ;;  %v3702_v61 = vld [vmem:[%s5478_s9 + $0x508] sm:$0xf0] }
  0xb2   :  { %1979 = vmatpush.bf16.msra.mxu0 %v2821_v10  ;;  %v3659_v10 = vld [vmem:[%s5478_s9 + $0x3b4] sm:$0xf] }
  0xb3   :  { %v3061_v18 = vor.u32 %v3659_v10, %v3058_v12  ;;  %v3748_v10 = vld [vmem:[%s5478_s9 + $0x67c] sm:$0xf]  ;;  %v3428_v12 = vld [vmem:[%s5478_s9 + $0x680] sm:$0xf] }
  0xb6   :  { %1980 = vmatpush.bf16.msra.mxu0 %v2705_v27  ;;  %v3631_v27 = vld [vmem:[%s5478_s9 + $0x2d4] sm:$0xf] }
  0xba   :  { %1981 = vmatpush.bf16.msra.mxu0 %v2589_v43 }
 0x12e   :  { %v289_v56 = vpop.f32.mrf.mxu2 }
 0x12f   :  { %v290_v57 = vadd.f32 %v3775_v55, %v289_v56  ;;  %v2925_v55 = vor.u32 %v3642_v47, %v2924_v46  ;;  %v2929_v56 = vor.u32 %v3628_v48, %v2926_v50  ;;  %v3413_v46 = vor.u32 %v3761_v37, %v3412_v36  ;;  %v3288_v47 = vld [vmem:[%s5478_s9 + $0x580] sm:$0xf]  ;;  %v3731_v48 = vld [vmem:[%s5478_s9 + $0x5f0] sm:$0xf0]  ;;  %v2826_v36 = vld [vmem:[%s5478_s9 + $0x254] sm:$0xf0] }
 0x130   :  { %v3417_v50 = vor.u32 %v3747_v40, %v3414_v41  ;;  %v2832_v37 = vld [vmem:[%s5478_s9 + $0x1e8] sm:$0xf]  ;;  %v2834_v40 = vld [vmem:[%s5478_s9 + $0x25c] sm:$0xf0]  ;;  %v2825_v41 = vor.u32 %v3615_v33, %v2824_v32 }
 0x131   :  { %v293_v58 = vmax.f32 %v290_v57, 0.0  ;;  %v2933_v57 = vor.u32 %v3643_v52, %v2932_v51  ;;  %1939 = vmatpush.bf16.msrb.mxu1 %v2925_v55  ;;  %1952 = vmatpush.bf16.msrb.mxu2 %v2929_v56  ;;  %v3290_v51 = vld [vmem:[%s5478_s9 + $0x5f4] sm:$0xf0]  ;;  %v3296_v52 = vld [vmem:[%s5478_s9 + $0x588] sm:$0xf] }
 0x132   :  { %v3718_v55 = vld [vmem:[%s5478_s9 + $0x58c] sm:$0xf]  ;;  %v3298_v56 = vld [vmem:[%s5478_s9 + $0x5fc] sm:$0xf0]  ;;  %v3188_v33 = vld [vmem:[%s5478_s9 + $0x4a8] sm:$0xf] }
 0x133   :  { %v294_v59 = vpack.c.bf16 %v293_v58, %v293_v58  ;;  %v2808_v58 = vld [vmem:[%s5478_s9 + $0x1d0] sm:$0xf]  ;;  %1965 = vmatpush.bf16.msrb.mxu3 %v2933_v57  ;;  %v3289_v57 = vor.u32 %v3731_v48, %v3288_v47  ;;  %v3301_v63 = vor.u32 %v3718_v55, %v3298_v56  ;;  %v3572_v47 = vld [vmem:[%s5478_s9 + $0xfc] sm:$0xf]  ;;  %v2718_v55 = vld [vmem:[%s5478_s9 + $0x174] sm:$0xf0] }
 0x135   :  { %371 = vmatmul.bf16.vlgmr.msra.gmra.mxu3 %v294_v59  ;;  %v3613_v59 = vld [vmem:[%s5478_s9 + $0x240] sm:$0xf0] }
 0x136   :  { %v291_v60 = vpop.f32.mrf.mxu2  ;;  %v2809_v4 = vor.u32 %v3613_v59, %v2808_v58  ;;  %v3293_v58 = vor.u32 %v3717_v49, %v3290_v51  ;;  %v3297_v59 = vor.u32 %v3732_v53, %v3296_v52  ;;  %v2710_v49 = vld [vmem:[%s5478_s9 + $0x16c] sm:$0xf0]  ;;  %v3587_v51 = vld [vmem:[%s5478_s9 + $0x170] sm:$0xf0] }
 0x137   :  { %v3599_v60 = vld [vmem:[%s5478_s9 + $0x1d4] sm:$0xf]  ;;  %1966 = vmatpush.bf16.msrb.mxu3 %v2817_v6  ;;  %v2713_v52 = vor.u32 %v3572_v47, %v2710_v49  ;;  %v3661_v49 = vld [vmem:[%s5478_s9 + $0x3c4] sm:$0xf] }
 0x138   :  { %v2813_v5 = vor.u32 %v3599_v60, %v2810_v62  ;;  %1940 = vmatpush.bf16.msrb.mxu1 %v2809_v4  ;;  %v3172_v60 = vld [vmem:[%s5478_s9 + $0x498] sm:$0xf]  ;;  %v3688_v62 = vld [vmem:[%s5478_s9 + $0x49c] sm:$0xf] }
 0x139   :  { %v3182_v4 = vld [vmem:[%s5478_s9 + $0x514] sm:$0xf0]  ;;  %v3177_v6 = vor.u32 %v3688_v62, %v3174_v0 }
 0x13a   :  { %1953 = vmatpush.bf16.msrb.mxu2 %v2813_v5  ;;  %v3173_v5 = vor.u32 %v3702_v61, %v3172_v60  ;;  %v2594_v61 = vld [vmem:[%s5478_s9 + $0x84] sm:$0xf0]  ;;  %v2600_v62 = vld [vmem:[%s5478_s9 + $0x18] sm:$0xf] }
 0x13b   :  { %1967 = vmatpush.bf16.msrb.mxu3 %v2701_v22  ;;  %v3630_v22 = vld [vmem:[%s5478_s9 + $0x2cc] sm:$0xf] }
 0x13c   :  { %1941 = vmatpush.bf16.msrb.mxu1 %v2693_v16  ;;  %v3066_v16 = vld [vmem:[%s5478_s9 + $0x42c] sm:$0xf0]  ;;  %v2945_v30 = vor.u32 %v3630_v22, %v2942_v24  ;;  %v3429_v22 = vor.u32 %v3763_v13, %v3428_v12  ;;  %v3719_v24 = vld [vmem:[%s5478_s9 + $0x594] sm:$0xf]  ;;  %v3618_v12 = vld [vmem:[%s5478_s9 + $0x268] sm:$0xf0] }
 0x13d   :  { %v3069_v23 = vor.u32 %v3660_v15, %v3066_v16  ;;  %v3749_v15 = vld [vmem:[%s5478_s9 + $0x684] sm:$0xf]  ;;  %v3430_v16 = vld [vmem:[%s5478_s9 + $0x6f4] sm:$0xf0]  ;;  %v3604_v13 = vld [vmem:[%s5478_s9 + $0x1fc] sm:$0xf] }
 0x13e   :  { %1954 = vmatpush.bf16.msrb.mxu2 %v2697_v21  ;;  %v3644_v21 = vld [vmem:[%s5478_s9 + $0x338] sm:$0xf0] }
 0x13f   :  { %1968 = vmatpush.bf16.msrb.mxu3 %v2585_v39  ;;  %v3602_v39 = vld [vmem:[%s5478_s9 + $0x1ec] sm:$0xf] }
 0x140   :  { %1942 = vmatpush.bf16.msrb.mxu1 %v2577_v35  ;;  %v2953_v35 = vor.u32 %v3631_v27, %v2950_v28  ;;  %v3734_v27 = vld [vmem:[%s5478_s9 + $0x608] sm:$0xf0]  ;;  %v3720_v28 = vld [vmem:[%s5478_s9 + $0x59c] sm:$0xf] }
 0x142   :  { %1955 = vmatpush.bf16.msrb.mxu2 %v2581_v38  ;;  %v3616_v38 = vld [vmem:[%s5478_s9 + $0x258] sm:$0xf0] }
 0x143   :  { %2013 = vmatpush.bf16.msra.mxu3 %v3413_v46  ;;  %v2833_v43 = vor.u32 %v3616_v38, %v2832_v37  ;;  %v3586_v46 = vld [vmem:[%s5478_s9 + $0x168] sm:$0xf0]  ;;  %v3190_v38 = vld [vmem:[%s5478_s9 + $0x51c] sm:$0xf0] }
 0x144   :  { %1987 = vmatpush.bf16.msra.mxu1 %v3405_v44  ;;  %v2837_v44 = vor.u32 %v3602_v39, %v2834_v40  ;;  %v3690_v37 = vld [vmem:[%s5478_s9 + $0x4ac] sm:$0xf]  ;;  %v3196_v39 = vld [vmem:[%s5478_s9 + $0x4b0] sm:$0xf]  ;;  %v3705_v40 = vld [vmem:[%s5478_s9 + $0x520] sm:$0xf0] }
 0x145   :  { %v3197_v47 = vor.u32 %v3705_v40, %v3196_v39  ;;  %v2618_v39 = vld [vmem:[%s5478_s9 + $0x9c] sm:$0xf0]  ;;  %v3436_v40 = vld [vmem:[%s5478_s9 + $0x688] sm:$0xf] }
 0x146   :  { %2000 = vmatpush.bf16.msra.mxu2 %v3409_v45  ;;  %v2708_v45 = vld [vmem:[%s5478_s9 + $0xf8] sm:$0xf] }
 0x147   :  { %2014 = vmatpush.bf16.msra.mxu3 %v3297_v59  ;;  %v2709_v48 = vor.u32 %v3586_v46, %v2708_v45  ;;  %v3543_v59 = vld [vmem:[%s5478_s9 + $0x14] sm:$0xf]  ;;  %v3072_v45 = vld [vmem:[%s5478_s9 + $0x3c0] sm:$0xf] }
 0x148   :  { %1988 = vmatpush.bf16.msra.mxu1 %v3289_v57  ;;  %v2592_v57 = vld [vmem:[%s5478_s9 + $0x10] sm:$0xf]  ;;  %v2597_v0 = vor.u32 %v3543_v59, %v2594_v61  ;;  %v3675_v46 = vld [vmem:[%s5478_s9 + $0x430] sm:$0xf0]  ;;  %v3632_v61 = vld [vmem:[%s5478_s9 + $0x2dc] sm:$0xf] }
 0x14a   :  { %2001 = vmatpush.bf16.msra.mxu2 %v3293_v58  ;;  %v3557_v58 = vld [vmem:[%s5478_s9 + $0x80] sm:$0xf0] }
 0x14b   :  { %2015 = vmatpush.bf16.msra.mxu3 %v3181_v7  ;;  %v2593_v60 = vor.u32 %v3557_v58, %v2592_v57  ;;  %v2956_v57 = vld [vmem:[%s5478_s9 + $0x2d8] sm:$0xf]  ;;  %v3646_v58 = vld [vmem:[%s5478_s9 + $0x348] sm:$0xf0] }
 0x14c   :  { %1989 = vmatpush.bf16.msra.mxu1 %v3173_v5  ;;  %v3777_v5 = vld [vmem:[%s5477_s8] ss:$0 sm:$0xff] }
 0x14e   :  { %2002 = vmatpush.bf16.msra.mxu2 %v3177_v6 }
 0x14f   :  { %2016 = vmatpush.bf16.msra.mxu3 %v3065_v19 }
 0x150   :  { %1990 = vmatpush.bf16.msra.mxu1 %v3057_v17 }
 0x152   :  { %2003 = vmatpush.bf16.msra.mxu2 %v3061_v18  ;;  %v3421_v18 = vor.u32 %v3762_v9, %v3420_v8  ;;  %v3603_v9 = vld [vmem:[%s5478_s9 + $0x1f4] sm:$0xf] }
 0x156   :  { %2004 = vmatpush.bf16.msra.mxu2 %v2945_v30 }
 0x1b8   :  { %v372_v20 = vpop.f32.mrf.mxu3 }
 0x1b9   :  { %v373_v26 = vadd.f32 %v3776_v3, %v372_v20  ;;  %v3689_v3 = vld [vmem:[%s5478_s9 + $0x4a4] sm:$0xf]  ;;  %v2940_v20 = vld [vmem:[%s5478_s9 + $0x2c8] sm:$0xf] }
 0x1ba   :  { %v3185_v11 = vor.u32 %v3689_v3, %v3182_v4  ;;  %v2941_v29 = vor.u32 %v3644_v21, %v2940_v20  ;;  %v2602_v3 = vld [vmem:[%s5478_s9 + $0x8c] sm:$0xf0]  ;;  %v3733_v21 = vld [vmem:[%s5478_s9 + $0x600] sm:$0xf0] }
 0x1bb   :  { %v376_v34 = vmax.f32 %v373_v26, 0.0  ;;  %v3645_v26 = vld [vmem:[%s5478_s9 + $0x340] sm:$0xf0]  ;;  %v2605_v4 = vor.u32 %v3544_v2, %v2602_v3  ;;  %v3304_v20 = vld [vmem:[%s5478_s9 + $0x590] sm:$0xf]  ;;  %v2957_v3 = vor.u32 %v3646_v58, %v2956_v57 }
 0x1bc   :  { %v2949_v31 = vor.u32 %v3645_v26, %v2948_v25  ;;  %1991 = vmatpush.bf16.msra.mxu1 %v2941_v29  ;;  %v3306_v25 = vld [vmem:[%s5478_s9 + $0x604] sm:$0xf0]  ;;  %v3312_v26 = vld [vmem:[%s5478_s9 + $0x598] sm:$0xf]  ;;  %v3314_v29 = vld [vmem:[%s5478_s9 + $0x60c] sm:$0xf0] }
 0x1bd   :  { %v377_v42 = vpack.c.bf16 %v376_v34, %v376_v34  ;;  %v3601_v34 = vld [vmem:[%s5478_s9 + $0x1e4] sm:$0xf]  ;;  %v3309_v32 = vor.u32 %v3719_v24, %v3306_v25  ;;  %v2966_v2 = vld [vmem:[%s5478_s9 + $0x354] sm:$0xf0]  ;;  %v2732_v24 = vld [vmem:[%s5478_s9 + $0x110] sm:$0xf] }
 0x1be   :  { %2017 = vmatpush.bf16.msra.mxu3 %v2949_v31  ;;  %v3305_v31 = vor.u32 %v3733_v21, %v3304_v20  ;;  %v3589_v25 = vld [vmem:[%s5478_s9 + $0x180] sm:$0xf0] }
 0x1bf   :  { %454 = vmatmul.bf16.vlgmr.msrb.gmra.mxu0 %v377_v42  ;;  %v2829_v42 = vor.u32 %v3601_v34, %v2826_v36  ;;  %v3704_v34 = vld [vmem:[%s5478_s9 + $0x518] sm:$0xf0]  ;;  %v3317_v36 = vor.u32 %v3720_v28, %v3314_v29  ;;  %v2608_v28 = vld [vmem:[%s5478_s9 + $0x20] sm:$0xf]  ;;  %v3721_v58 = vld [vmem:[%s5478_s9 + $0x5a4] sm:$0xf] }
 0x1c0   :  { %v374_v54 = vpop.f32.mrf.mxu3  ;;  %2026 = vmatpush.bf16.msrb.mxu0 %v3417_v50  ;;  %1992 = vmatpush.bf16.msra.mxu1 %v2825_v41  ;;  %v2716_v50 = vld [vmem:[%s5478_s9 + $0x100] sm:$0xf]  ;;  %v3691_v41 = vld [vmem:[%s5478_s9 + $0x4b4] sm:$0xf] }
 0x1c1   :  { %2005 = vmatpush.bf16.msra.mxu2 %v2829_v42  ;;  %v2717_v53 = vor.u32 %v3587_v51, %v2716_v50  ;;  %v3573_v54 = vld [vmem:[%s5478_s9 + $0x104] sm:$0xf]  ;;  %v3198_v42 = vld [vmem:[%s5478_s9 + $0x524] sm:$0xf0]  ;;  %v3074_v50 = vld [vmem:[%s5478_s9 + $0x434] sm:$0xf0] }
 0x1c2   :  { %2018 = vmatpush.bf16.msra.mxu3 %v2833_v43  ;;  %v2721_v56 = vor.u32 %v3573_v54, %v2718_v55  ;;  %v3189_v43 = vor.u32 %v3704_v34, %v3188_v33  ;;  %v3080_v51 = vld [vmem:[%s5478_s9 + $0x3c8] sm:$0xf]  ;;  %v3082_v54 = vld [vmem:[%s5478_s9 + $0x43c] sm:$0xf0]  ;;  %v3073_v55 = vor.u32 %v3675_v46, %v3072_v45  ;;  %v2610_v33 = vld [vmem:[%s5478_s9 + $0x94] sm:$0xf0]  ;;  %v2733_v34 = vor.u32 %v3589_v25, %v2732_v24 }
 0x1c3   :  { %v3098_v24 = vld [vmem:[%s5478_s9 + $0x44c] sm:$0xf0] }
 0x1c4   :  { %2027 = vmatpush.bf16.msrb.mxu0 %v3301_v63  ;;  %1993 = vmatpush.bf16.msra.mxu1 %v2709_v48  ;;  %v3558_v63 = vld [vmem:[%s5478_s9 + $0x88] sm:$0xf0]  ;;  %v3201_v48 = vor.u32 %v3691_v41, %v3198_v42  ;;  %v3764_v41 = vld [vmem:[%s5478_s9 + $0x6f8] sm:$0xf0] }
 0x1c5   :  { %2006 = vmatpush.bf16.msra.mxu2 %v2713_v52  ;;  %v2601_v1 = vor.u32 %v3558_v63, %v2600_v62  ;;  %v3676_v52 = vld [vmem:[%s5478_s9 + $0x438] sm:$0xf0]  ;;  %v2958_v62 = vld [vmem:[%s5478_s9 + $0x34c] sm:$0xf0]  ;;  %v2964_v63 = vld [vmem:[%s5478_s9 + $0x2e0] sm:$0xf] }
 0x1c6   :  { %2019 = vmatpush.bf16.msra.mxu3 %v2717_v53  ;;  %v3662_v53 = vld [vmem:[%s5478_s9 + $0x3cc] sm:$0xf]  ;;  %v3081_v59 = vor.u32 %v3676_v52, %v3080_v51  ;;  %v3437_v52 = vor.u32 %v3764_v41, %v3436_v40  ;;  %v3619_v40 = vld [vmem:[%s5478_s9 + $0x270] sm:$0xf0] }
 0x1c7   :  { %v3750_v42 = vld [vmem:[%s5478_s9 + $0x68c] sm:$0xf] }
 0x1c8   :  { %2028 = vmatpush.bf16.msrb.mxu0 %v3185_v11  ;;  %1994 = vmatpush.bf16.msra.mxu1 %v2593_v60  ;;  %v3422_v11 = vld [vmem:[%s5478_s9 + $0x6ec] sm:$0xf0]  ;;  %v3085_v60 = vor.u32 %v3662_v53, %v3082_v54  ;;  %v3320_v54 = vld [vmem:[%s5478_s9 + $0x5a0] sm:$0xf] }
 0x1c9   :  { %2007 = vmatpush.bf16.msra.mxu2 %v2597_v0  ;;  %v3425_v19 = vor.u32 %v3748_v10, %v3422_v11  ;;  %v3647_v0 = vld [vmem:[%s5478_s9 + $0x350] sm:$0xf0]  ;;  %v2842_v10 = vld [vmem:[%s5478_s9 + $0x264] sm:$0xf0]  ;;  %v2848_v11 = vld [vmem:[%s5478_s9 + $0x1f8] sm:$0xf] }
 0x1ca   :  { %2020 = vmatpush.bf16.msra.mxu3 %v2601_v1  ;;  %v3633_v1 = vld [vmem:[%s5478_s9 + $0x2e4] sm:$0xf]  ;;  %v2849_v20 = vor.u32 %v3618_v12, %v2848_v11  ;;  %v3214_v11 = vld [vmem:[%s5478_s9 + $0x534] sm:$0xf0] }
 0x1cb   :  { %v2969_v8 = vor.u32 %v3633_v1, %v2966_v2  ;;  %v3204_v2 = vld [vmem:[%s5478_s9 + $0x4b8] sm:$0xf] }
 0x1cc   :  { %2029 = vmatpush.bf16.msrb.mxu0 %v3069_v23  ;;  %v3433_v23 = vor.u32 %v3749_v15, %v3430_v16  ;;  %v2845_v16 = vor.u32 %v3603_v9, %v2842_v10  ;;  %v3707_v9 = vld [vmem:[%s5478_s9 + $0x530] sm:$0xf0]  ;;  %v3693_v10 = vld [vmem:[%s5478_s9 + $0x4c4] sm:$0xf] }
 0x1d0   :  { %2030 = vmatpush.bf16.msrb.mxu0 %v2953_v35  ;;  %v3313_v35 = vor.u32 %v3734_v27, %v3312_v26  ;;  %v3575_v26 = vld [vmem:[%s5478_s9 + $0x114] sm:$0xf]  ;;  %v2734_v27 = vld [vmem:[%s5478_s9 + $0x184] sm:$0xf0] }
 0x1d4   :  { %2031 = vmatpush.bf16.msrb.mxu0 %v2837_v44  ;;  %v3193_v44 = vor.u32 %v3690_v37, %v3190_v38  ;;  %v3560_v37 = vld [vmem:[%s5478_s9 + $0x98] sm:$0xf0]  ;;  %v3546_v38 = vld [vmem:[%s5478_s9 + $0x2c] sm:$0xf] }
 0x1d5   :  { %v2621_v51 = vor.u32 %v3546_v38, %v2618_v39  ;;  %v2856_v39 = vld [vmem:[%s5478_s9 + $0x200] sm:$0xf] }
 0x1d8   :  { %2032 = vmatpush.bf16.msrb.mxu0 %v2721_v56  ;;  %v3077_v56 = vor.u32 %v3661_v49, %v3074_v50  ;;  %v3446_v49 = vld [vmem:[%s5478_s9 + $0x704] sm:$0xf0] }
 0x1dc   :  { %2033 = vmatpush.bf16.msrb.mxu0 %v2605_v4  ;;  %v2961_v4 = vor.u32 %v3632_v61, %v2958_v62  ;;  %v3736_v61 = vld [vmem:[%s5478_s9 + $0x618] sm:$0xf0]  ;;  %v3722_v62 = vld [vmem:[%s5478_s9 + $0x5ac] sm:$0xf] }
 0x23c   :  { %v455_v6 = vpop.f32.mrf.mxu0 }
 0x23d   :  { %v456_v7 = vadd.f32 %v3777_v5, %v455_v6  ;;  %v2840_v5 = vld [vmem:[%s5478_s9 + $0x1f0] sm:$0xf]  ;;  %v3617_v6 = vld [vmem:[%s5478_s9 + $0x260] sm:$0xf0] }
 0x23e   :  { %v2841_v15 = vor.u32 %v3617_v6, %v2840_v5  ;;  %v3692_v6 = vld [vmem:[%s5478_s9 + $0x4bc] sm:$0xf] }
 0x23f   :  { %v459_v14 = vmax.f32 %v456_v7, 0.0  ;;  %v2965_v7 = vor.u32 %v3647_v0, %v2964_v63  ;;  %v3330_v63 = vld [vmem:[%s5478_s9 + $0x61c] sm:$0xf0] }
 0x240   :  { %v3333_v5 = vor.u32 %v3722_v62, %v3330_v63 }
 0x241   :  { %v4408_v17 = vpack.c.bf16 %v459_v14, %v459_v14  ;;  %v2850_v14 = vld [vmem:[%s5478_s9 + $0x26c] sm:$0xf0] }
 0x242   :  { %v2853_v21 = vor.u32 %v3604_v13, %v2850_v14  ;;  %v3088_v14 = vld [vmem:[%s5478_s9 + $0x3d0] sm:$0xf] }
 0x243   :  { %1943 = vmatmul.bf16.vlgmr.msrb.gmra.mxu1 %v4408_v17  ;;  %1956 = vmatmul.bf16.vlgmr.msrb.gmra.mxu2 %v4408_v17 }
 0x244   :  { %1969 = vmatmul.bf16.vlgmr.msrb.gmra.mxu3 %v4408_v17  ;;  %1982 = vmatmul.bf16.vlgmr.msra.gmra.mxu0 %v4408_v17  ;;  %v457_v30 = vpop.f32.mrf.mxu0 }
 0x245   :  { %2039 = vmatpush.bf16.msrb.mxu1 %v3421_v18  ;;  %2052 = vmatpush.bf16.msrb.mxu2 %v3425_v19  ;;  %v2724_v18 = vld [vmem:[%s5478_s9 + $0x108] sm:$0xf]  ;;  %v3588_v19 = vld [vmem:[%s5478_s9 + $0x178] sm:$0xf0] }
 0x246   :  { %2065 = vmatpush.bf16.msrb.mxu3 %v3429_v22  ;;  %2078 = vmatpush.bf16.msra.mxu0 %v3433_v23  ;;  %v3574_v22 = vld [vmem:[%s5478_s9 + $0x10c] sm:$0xf]  ;;  %v2726_v23 = vld [vmem:[%s5478_s9 + $0x17c] sm:$0xf0]  ;;  %v2725_v29 = vor.u32 %v3588_v19, %v2724_v18  ;;  %v3217_v18 = vor.u32 %v3693_v10, %v3214_v11  ;;  %v3663_v19 = vld [vmem:[%s5478_s9 + $0x3d4] sm:$0xf] }
 0x247   :  { %v2729_v30 = vor.u32 %v3574_v22, %v2726_v23  ;;  %v3678_v22 = vld [vmem:[%s5478_s9 + $0x448] sm:$0xf0]  ;;  %v3664_v23 = vld [vmem:[%s5478_s9 + $0x3dc] sm:$0xf] }
 0x248   :  { %v3766_v10 = vld [vmem:[%s5478_s9 + $0x708] sm:$0xf0]  ;;  %v3752_v11 = vld [vmem:[%s5478_s9 + $0x69c] sm:$0xf] }
 0x249   :  { %2040 = vmatpush.bf16.msrb.mxu1 %v3305_v31  ;;  %2053 = vmatpush.bf16.msrb.mxu2 %v3309_v32  ;;  %v3559_v31 = vld [vmem:[%s5478_s9 + $0x90] sm:$0xf0]  ;;  %v3545_v32 = vld [vmem:[%s5478_s9 + $0x24] sm:$0xf] }
 0x24a   :  { %2066 = vmatpush.bf16.msrb.mxu3 %v3313_v35  ;;  %2079 = vmatpush.bf16.msra.mxu0 %v3317_v36  ;;  %v2737_v35 = vor.u32 %v3575_v26, %v2734_v27  ;;  %v2616_v36 = vld [vmem:[%s5478_s9 + $0x28] sm:$0xf]  ;;  %v2609_v45 = vor.u32 %v3559_v31, %v2608_v28  ;;  %v2613_v46 = vor.u32 %v3545_v32, %v2610_v33  ;;  %v3648_v28 = vld [vmem:[%s5478_s9 + $0x358] sm:$0xf0]  ;;  %v3634_v31 = vld [vmem:[%s5478_s9 + $0x2ec] sm:$0xf] }
 0x24b   :  { %v2617_v50 = vor.u32 %v3560_v37, %v2616_v36  ;;  %v2972_v27 = vld [vmem:[%s5478_s9 + $0x2e8] sm:$0xf]  ;;  %v2974_v32 = vld [vmem:[%s5478_s9 + $0x35c] sm:$0xf0]  ;;  %v2980_v33 = vld [vmem:[%s5478_s9 + $0x2f0] sm:$0xf] }
 0x24c   :  { %v2982_v36 = vld [vmem:[%s5478_s9 + $0x364] sm:$0xf0]  ;;  %v2973_v37 = vor.u32 %v3648_v28, %v2972_v27  ;;  %v2977_v38 = vor.u32 %v3634_v31, %v2974_v32  ;;  %v3723_v28 = vld [vmem:[%s5478_s9 + $0x5b4] sm:$0xf]  ;;  %v3738_v31 = vld [vmem:[%s5478_s9 + $0x628] sm:$0xf0] }
 0x24d   :  { %2041 = vmatpush.bf16.msrb.mxu1 %v3189_v43  ;;  %2054 = vmatpush.bf16.msrb.mxu2 %v3193_v44  ;;  %v3438_v43 = vld [vmem:[%s5478_s9 + $0x6fc] sm:$0xf0]  ;;  %v3444_v44 = vld [vmem:[%s5478_s9 + $0x690] sm:$0xf]  ;;  %v3724_v32 = vld [vmem:[%s5478_s9 + $0x5bc] sm:$0xf] }
 0x24e   :  { %2067 = vmatpush.bf16.msrb.mxu3 %v3197_v47  ;;  %2080 = vmatpush.bf16.msra.mxu0 %v3201_v48  ;;  %v3765_v47 = vld [vmem:[%s5478_s9 + $0x700] sm:$0xf0]  ;;  %v3751_v48 = vld [vmem:[%s5478_s9 + $0x694] sm:$0xf]  ;;  %v3441_v53 = vor.u32 %v3750_v42, %v3438_v43 }
 0x24f   :  { %v3449_v57 = vor.u32 %v3751_v48, %v3446_v49  ;;  %v3605_v43 = vld [vmem:[%s5478_s9 + $0x204] sm:$0xf]  ;;  %v2866_v48 = vld [vmem:[%s5478_s9 + $0x27c] sm:$0xf0]  ;;  %v2857_v49 = vor.u32 %v3619_v40, %v2856_v39  ;;  %v3694_v40 = vld [vmem:[%s5478_s9 + $0x4cc] sm:$0xf] }
 0x251   :  { %2042 = vmatpush.bf16.msrb.mxu1 %v3073_v55  ;;  %2055 = vmatpush.bf16.msrb.mxu2 %v3077_v56  ;;  %v3735_v55 = vld [vmem:[%s5478_s9 + $0x610] sm:$0xf0]  ;;  %v3445_v56 = vor.u32 %v3765_v47, %v3444_v44  ;;  %v2858_v44 = vld [vmem:[%s5478_s9 + $0x274] sm:$0xf0]  ;;  %v3606_v47 = vld [vmem:[%s5478_s9 + $0x20c] sm:$0xf] }
 0x252   :  { %2068 = vmatpush.bf16.msrb.mxu3 %v3081_v59  ;;  %2081 = vmatpush.bf16.msra.mxu0 %v3085_v60  ;;  %v3322_v59 = vld [vmem:[%s5478_s9 + $0x614] sm:$0xf0]  ;;  %v3328_v60 = vld [vmem:[%s5478_s9 + $0x5a8] sm:$0xf]  ;;  %v3321_v0 = vor.u32 %v3735_v55, %v3320_v54  ;;  %v2869_v54 = vor.u32 %v3606_v47, %v2866_v48  ;;  %v3576_v55 = vld [vmem:[%s5478_s9 + $0x11c] sm:$0xf] }
 0x253   :  { %1995 = vmatmul.bf16.vlgmr.msra.gmra.mxu1 %v4408_v17  ;;  %2008 = vmatmul.bf16.vlgmr.msra.gmra.mxu2 %v4408_v17  ;;  %v3325_v1 = vor.u32 %v3721_v58, %v3322_v59  ;;  %v3591_v58 = vld [vmem:[%s5478_s9 + $0x190] sm:$0xf0]  ;;  %v3577_v59 = vld [vmem:[%s5478_s9 + $0x124] sm:$0xf]  ;;  %v3104_v48 = vld [vmem:[%s5478_s9 + $0x3e0] sm:$0xf] }
 0x254   :  { %2021 = vmatmul.bf16.vlgmr.msra.gmra.mxu3 %v4408_v17  ;;  %2034 = vmatmul.bf16.vlgmr.msrb.gmra.mxu0 %v4408_v17 }
 0x255   :  { %2043 = vmatpush.bf16.msrb.mxu1 %v2957_v3  ;;  %2056 = vmatpush.bf16.msrb.mxu2 %v2961_v4  ;;  %v3706_v3 = vld [vmem:[%s5478_s9 + $0x528] sm:$0xf0]  ;;  %v3329_v4 = vor.u32 %v3736_v61, %v3328_v60  ;;  %v2750_v60 = vld [vmem:[%s5478_s9 + $0x194] sm:$0xf0]  ;;  %v2624_v61 = vld [vmem:[%s5478_s9 + $0x30] sm:$0xf] }
 0x256   :  { %2069 = vmatpush.bf16.msrb.mxu3 %v2965_v7  ;;  %2082 = vmatpush.bf16.msra.mxu0 %v2969_v8  ;;  %v3206_v7 = vld [vmem:[%s5478_s9 + $0x52c] sm:$0xf0]  ;;  %v3212_v8 = vld [vmem:[%s5478_s9 + $0x4c0] sm:$0xf]  ;;  %v3205_v12 = vor.u32 %v3706_v3, %v3204_v2  ;;  %v2626_v2 = vld [vmem:[%s5478_s9 + $0xa4] sm:$0xf0] }
 0x257   :  { %v3209_v13 = vor.u32 %v3692_v6, %v3206_v7  ;;  %v3562_v6 = vld [vmem:[%s5478_s9 + $0xa8] sm:$0xf0]  ;;  %v3548_v7 = vld [vmem:[%s5478_s9 + $0x3c] sm:$0xf] }
 0x259   :  { %2044 = vmatpush.bf16.msrb.mxu1 %v2841_v15  ;;  %2057 = vmatpush.bf16.msrb.mxu2 %v2845_v16  ;;  %v3677_v15 = vld [vmem:[%s5478_s9 + $0x440] sm:$0xf0]  ;;  %v3213_v16 = vor.u32 %v3707_v9, %v3212_v8  ;;  %v2634_v8 = vld [vmem:[%s5478_s9 + $0xac] sm:$0xf0]  ;;  %v3452_v9 = vld [vmem:[%s5478_s9 + $0x698] sm:$0xf] }
 0x25a   :  { %2070 = vmatpush.bf16.msrb.mxu3 %v2849_v20  ;;  %2083 = vmatpush.bf16.msra.mxu0 %v2853_v21  ;;  %v3090_v20 = vld [vmem:[%s5478_s9 + $0x444] sm:$0xf0]  ;;  %v3096_v21 = vld [vmem:[%s5478_s9 + $0x3d8] sm:$0xf]  ;;  %v3089_v25 = vor.u32 %v3677_v15, %v3088_v14 }
 0x25b   :  { %v3093_v26 = vor.u32 %v3663_v19, %v3090_v20  ;;  %v3462_v19 = vld [vmem:[%s5478_s9 + $0x714] sm:$0xf0] }
 0x25d   :  { %2045 = vmatpush.bf16.msrb.mxu1 %v2725_v29  ;;  %2058 = vmatpush.bf16.msrb.mxu2 %v2729_v30  ;;  %v3097_v29 = vor.u32 %v3678_v22, %v3096_v21  ;;  %v3101_v30 = vor.u32 %v3664_v23, %v3098_v24  ;;  %v2637_v21 = vor.u32 %v3548_v7, %v2634_v8  ;;  %v3336_v24 = vld [vmem:[%s5478_s9 + $0x5b0] sm:$0xf] }
 0x25e   :  { %2071 = vmatpush.bf16.msrb.mxu3 %v2733_v34  ;;  %2084 = vmatpush.bf16.msra.mxu0 %v2737_v35  ;;  %v3649_v34 = vld [vmem:[%s5478_s9 + $0x360] sm:$0xf0]  ;;  %v3635_v35 = vld [vmem:[%s5478_s9 + $0x2f4] sm:$0xf]  ;;  %v3453_v22 = vor.u32 %v3766_v10, %v3452_v9  ;;  %v2872_v8 = vld [vmem:[%s5478_s9 + $0x210] sm:$0xf] }
 0x25f   :  { %v2981_v41 = vor.u32 %v3649_v34, %v2980_v33  ;;  %v2985_v42 = vor.u32 %v3635_v35, %v2982_v36  ;;  %v3346_v33 = vld [vmem:[%s5478_s9 + $0x62c] sm:$0xf0]  ;;  %v3220_v36 = vld [vmem:[%s5478_s9 + $0x4c8] sm:$0xf]  ;;  %v3621_v9 = vld [vmem:[%s5478_s9 + $0x280] sm:$0xf0] }
 0x260   :  { %v3349_v39 = vor.u32 %v3724_v32, %v3346_v33 }
 0x261   :  { %2046 = vmatpush.bf16.msrb.mxu1 %v2609_v45  ;;  %2059 = vmatpush.bf16.msrb.mxu2 %v2613_v46  ;;  %v2864_v45 = vld [vmem:[%s5478_s9 + $0x208] sm:$0xf]  ;;  %v3620_v46 = vld [vmem:[%s5478_s9 + $0x278] sm:$0xf0] }
 0x262   :  { %2072 = vmatpush.bf16.msrb.mxu3 %v2617_v50  ;;  %2085 = vmatpush.bf16.msra.mxu0 %v2621_v51  ;;  %v2861_v50 = vor.u32 %v3605_v43, %v2858_v44  ;;  %v2740_v51 = vld [vmem:[%s5478_s9 + $0x118] sm:$0xf]  ;;  %v3709_v43 = vld [vmem:[%s5478_s9 + $0x540] sm:$0xf0]  ;;  %v3695_v44 = vld [vmem:[%s5478_s9 + $0x4d4] sm:$0xf] }
 0x264   :  { %2047 = vmatmul.bf16.vlgmr.msrb.gmra.mxu1 %v4408_v17  ;;  %2060 = vmatmul.bf16.vlgmr.msrb.gmra.mxu2 %v4408_v17 }
 0x265   :  { %2091 = vmatpush.bf16.msra.mxu1 %v3437_v52  ;;  %2104 = vmatpush.bf16.msra.mxu2 %v3441_v53  ;;  %v3590_v52 = vld [vmem:[%s5478_s9 + $0x188] sm:$0xf0]  ;;  %v2865_v53 = vor.u32 %v3620_v46, %v2864_v45  ;;  %v3230_v45 = vld [vmem:[%s5478_s9 + $0x544] sm:$0xf0] }
 0x266   :  { %2117 = vmatpush.bf16.msra.mxu3 %v3445_v56  ;;  %2130 = vmatpush.bf16.msrb.mxu0 %v3449_v57  ;;  %v2742_v56 = vld [vmem:[%s5478_s9 + $0x18c] sm:$0xf0]  ;;  %v2748_v57 = vld [vmem:[%s5478_s9 + $0x120] sm:$0xf]  ;;  %v2741_v62 = vor.u32 %v3590_v52, %v2740_v51  ;;  %v3233_v51 = vor.u32 %v3695_v44, %v3230_v45  ;;  %v3665_v52 = vld [vmem:[%s5478_s9 + $0x3e4] sm:$0xf] }
 0x267   :  { %2073 = vmatmul.bf16.vlgmr.msrb.gmra.mxu3 %v4408_v17  ;;  %2086 = vmatmul.bf16.vlgmr.msra.gmra.mxu0 %v4408_v17  ;;  %v2745_v63 = vor.u32 %v3576_v55, %v2742_v56  ;;  %v2749_v3 = vor.u32 %v3591_v58, %v2748_v57  ;;  %v3680_v55 = vld [vmem:[%s5478_s9 + $0x458] sm:$0xf0]  ;;  %v3666_v56 = vld [vmem:[%s5478_s9 + $0x3ec] sm:$0xf]  ;;  %v3114_v57 = vld [vmem:[%s5478_s9 + $0x45c] sm:$0xf0] }
 0x268   :  { %v3768_v44 = vld [vmem:[%s5478_s9 + $0x718] sm:$0xf0]  ;;  %v3754_v45 = vld [vmem:[%s5478_s9 + $0x6ac] sm:$0xf] }
 0x269   :  { %2092 = vmatpush.bf16.msra.mxu1 %v3321_v0  ;;  %2105 = vmatpush.bf16.msra.mxu2 %v3325_v1  ;;  %v3561_v0 = vld [vmem:[%s5478_s9 + $0xa0] sm:$0xf0]  ;;  %v3547_v1 = vld [vmem:[%s5478_s9 + $0x34] sm:$0xf] }
 0x26a   :  { %2118 = vmatpush.bf16.msra.mxu3 %v3329_v4  ;;  %2131 = vmatpush.bf16.msrb.mxu0 %v3333_v5  ;;  %v2753_v4 = vor.u32 %v3577_v59, %v2750_v60  ;;  %v2632_v5 = vld [vmem:[%s5478_s9 + $0x38] sm:$0xf]  ;;  %v2625_v14 = vor.u32 %v3561_v0, %v2624_v61  ;;  %v2629_v15 = vor.u32 %v3547_v1, %v2626_v2  ;;  %v3650_v61 = vld [vmem:[%s5478_s9 + $0x368] sm:$0xf0]  ;;  %v3636_v0 = vld [vmem:[%s5478_s9 + $0x2fc] sm:$0xf] }
 0x26b   :  { %v2633_v20 = vor.u32 %v3562_v6, %v2632_v5  ;;  %v2988_v60 = vld [vmem:[%s5478_s9 + $0x2f8] sm:$0xf]  ;;  %v2990_v1 = vld [vmem:[%s5478_s9 + $0x36c] sm:$0xf0]  ;;  %v2996_v2 = vld [vmem:[%s5478_s9 + $0x300] sm:$0xf] }
 0x26c   :  { %v2998_v5 = vld [vmem:[%s5478_s9 + $0x374] sm:$0xf0]  ;;  %v2989_v6 = vor.u32 %v3650_v61, %v2988_v60  ;;  %v2993_v7 = vor.u32 %v3636_v0, %v2990_v1  ;;  %v3725_v61 = vld [vmem:[%s5478_s9 + $0x5c4] sm:$0xf]  ;;  %v3740_v0 = vld [vmem:[%s5478_s9 + $0x638] sm:$0xf0] }
 0x26d   :  { %2093 = vmatpush.bf16.msra.mxu1 %v3205_v12  ;;  %2106 = vmatpush.bf16.msra.mxu2 %v3209_v13  ;;  %v3454_v12 = vld [vmem:[%s5478_s9 + $0x70c] sm:$0xf0]  ;;  %v3460_v13 = vld [vmem:[%s5478_s9 + $0x6a0] sm:$0xf]  ;;  %v3726_v1 = vld [vmem:[%s5478_s9 + $0x5cc] sm:$0xf] }
 0x26e   :  { %2119 = vmatpush.bf16.msra.mxu3 %v3213_v16  ;;  %2132 = vmatpush.bf16.msrb.mxu0 %v3217_v18  ;;  %v3767_v16 = vld [vmem:[%s5478_s9 + $0x710] sm:$0xf0]  ;;  %v3753_v18 = vld [vmem:[%s5478_s9 + $0x6a4] sm:$0xf]  ;;  %v3457_v23 = vor.u32 %v3752_v11, %v3454_v12 }
 0x26f   :  { %v3465_v27 = vor.u32 %v3753_v18, %v3462_v19  ;;  %v3607_v12 = vld [vmem:[%s5478_s9 + $0x214] sm:$0xf]  ;;  %v2882_v18 = vld [vmem:[%s5478_s9 + $0x28c] sm:$0xf0]  ;;  %v2873_v19 = vor.u32 %v3621_v9, %v2872_v8  ;;  %v3696_v9 = vld [vmem:[%s5478_s9 + $0x4dc] sm:$0xf] }
 0x271   :  { %2094 = vmatpush.bf16.msra.mxu1 %v3089_v25  ;;  %2107 = vmatpush.bf16.msra.mxu2 %v3093_v26  ;;  %v3737_v25 = vld [vmem:[%s5478_s9 + $0x620] sm:$0xf0]  ;;  %v3461_v26 = vor.u32 %v3767_v16, %v3460_v13  ;;  %v2874_v13 = vld [vmem:[%s5478_s9 + $0x284] sm:$0xf0]  ;;  %v3608_v16 = vld [vmem:[%s5478_s9 + $0x21c] sm:$0xf] }
 0x272   :  { %2120 = vmatpush.bf16.msra.mxu3 %v3097_v29  ;;  %2133 = vmatpush.bf16.msrb.mxu0 %v3101_v30  ;;  %v3338_v29 = vld [vmem:[%s5478_s9 + $0x624] sm:$0xf0]  ;;  %v3344_v30 = vld [vmem:[%s5478_s9 + $0x5b8] sm:$0xf]  ;;  %v3337_v34 = vor.u32 %v3737_v25, %v3336_v24  ;;  %v2885_v24 = vor.u32 %v3608_v16, %v2882_v18  ;;  %v3578_v25 = vld [vmem:[%s5478_s9 + $0x12c] sm:$0xf] }
 0x273   :  { %v3341_v35 = vor.u32 %v3723_v28, %v3338_v29  ;;  %v3593_v28 = vld [vmem:[%s5478_s9 + $0x1a0] sm:$0xf0]  ;;  %v3579_v29 = vld [vmem:[%s5478_s9 + $0x134] sm:$0xf]  ;;  %v3120_v18 = vld [vmem:[%s5478_s9 + $0x3f0] sm:$0xf] }
 0x275   :  { %2095 = vmatpush.bf16.msra.mxu1 %v2973_v37  ;;  %2108 = vmatpush.bf16.msra.mxu2 %v2977_v38  ;;  %v3708_v37 = vld [vmem:[%s5478_s9 + $0x538] sm:$0xf0]  ;;  %v3345_v38 = vor.u32 %v3738_v31, %v3344_v30  ;;  %v2766_v30 = vld [vmem:[%s5478_s9 + $0x1a4] sm:$0xf0]  ;;  %v2640_v31 = vld [vmem:[%s5478_s9 + $0x40] sm:$0xf] }
 0x276   :  { %2121 = vmatpush.bf16.msra.mxu3 %v2981_v41  ;;  %2134 = vmatpush.bf16.msrb.mxu0 %v2985_v42  ;;  %v3222_v41 = vld [vmem:[%s5478_s9 + $0x53c] sm:$0xf0]  ;;  %v3228_v42 = vld [vmem:[%s5478_s9 + $0x4d0] sm:$0xf]  ;;  %v3221_v46 = vor.u32 %v3708_v37, %v3220_v36  ;;  %v2642_v36 = vld [vmem:[%s5478_s9 + $0xb4] sm:$0xf0] }
 0x277   :  { %v3225_v47 = vor.u32 %v3694_v40, %v3222_v41  ;;  %v3564_v40 = vld [vmem:[%s5478_s9 + $0xb8] sm:$0xf0]  ;;  %v3550_v41 = vld [vmem:[%s5478_s9 + $0x4c] sm:$0xf] }
 0x279   :  { %2096 = vmatpush.bf16.msra.mxu1 %v2857_v49  ;;  %2109 = vmatpush.bf16.msra.mxu2 %v2861_v50  ;;  %v3679_v49 = vld [vmem:[%s5478_s9 + $0x450] sm:$0xf0]  ;;  %v3229_v50 = vor.u32 %v3709_v43, %v3228_v42  ;;  %v2650_v42 = vld [vmem:[%s5478_s9 + $0xbc] sm:$0xf0]  ;;  %v3468_v43 = vld [vmem:[%s5478_s9 + $0x6a8] sm:$0xf] }
 0x27a   :  { %2122 = vmatpush.bf16.msra.mxu3 %v2865_v53  ;;  %2135 = vmatpush.bf16.msrb.mxu0 %v2869_v54  ;;  %v3106_v53 = vld [vmem:[%s5478_s9 + $0x454] sm:$0xf0]  ;;  %v3112_v54 = vld [vmem:[%s5478_s9 + $0x3e8] sm:$0xf]  ;;  %v3105_v58 = vor.u32 %v3679_v49, %v3104_v48 }
 0x27b   :  { %v3109_v59 = vor.u32 %v3665_v52, %v3106_v53  ;;  %v3478_v52 = vld [vmem:[%s5478_s9 + $0x724] sm:$0xf0] }
 0x27d   :  { %2097 = vmatpush.bf16.msra.mxu1 %v2741_v62  ;;  %2110 = vmatpush.bf16.msra.mxu2 %v2745_v63  ;;  %v3113_v62 = vor.u32 %v3680_v55, %v3112_v54  ;;  %v3117_v63 = vor.u32 %v3666_v56, %v3114_v57  ;;  %v2653_v54 = vor.u32 %v3550_v41, %v2650_v42  ;;  %v3352_v57 = vld [vmem:[%s5478_s9 + $0x5c0] sm:$0xf] }
 0x27e   :  { %2123 = vmatpush.bf16.msra.mxu3 %v2749_v3  ;;  %2136 = vmatpush.bf16.msrb.mxu0 %v2753_v4  ;;  %v3651_v3 = vld [vmem:[%s5478_s9 + $0x370] sm:$0xf0]  ;;  %v3637_v4 = vld [vmem:[%s5478_s9 + $0x304] sm:$0xf]  ;;  %v3469_v55 = vor.u32 %v3768_v44, %v3468_v43  ;;  %v2888_v42 = vld [vmem:[%s5478_s9 + $0x220] sm:$0xf] }
 0x27f   :  { %v2997_v10 = vor.u32 %v3651_v3, %v2996_v2  ;;  %v3001_v11 = vor.u32 %v3637_v4, %v2998_v5  ;;  %v3362_v2 = vld [vmem:[%s5478_s9 + $0x63c] sm:$0xf0]  ;;  %v3236_v5 = vld [vmem:[%s5478_s9 + $0x4d8] sm:$0xf]  ;;  %v3623_v43 = vld [vmem:[%s5478_s9 + $0x290] sm:$0xf0] }
 0x280   :  { %v3365_v8 = vor.u32 %v3726_v1, %v3362_v2 }
 0x281   :  { %2098 = vmatpush.bf16.msra.mxu1 %v2625_v14  ;;  %2111 = vmatpush.bf16.msra.mxu2 %v2629_v15  ;;  %v2880_v14 = vld [vmem:[%s5478_s9 + $0x218] sm:$0xf]  ;;  %v3622_v15 = vld [vmem:[%s5478_s9 + $0x288] sm:$0xf0] }
 0x282   :  { %2124 = vmatpush.bf16.msra.mxu3 %v2633_v20  ;;  %2137 = vmatpush.bf16.msrb.mxu0 %v2637_v21  ;;  %v2877_v20 = vor.u32 %v3607_v12, %v2874_v13  ;;  %v2756_v21 = vld [vmem:[%s5478_s9 + $0x128] sm:$0xf]  ;;  %v3711_v12 = vld [vmem:[%s5478_s9 + $0x550] sm:$0xf0]  ;;  %v3697_v13 = vld [vmem:[%s5478_s9 + $0x4e4] sm:$0xf] }
 0x284   :  { %2099 = vmatmul.bf16.vlgmr.msra.gmra.mxu1 %v4408_v17  ;;  %2112 = vmatmul.bf16.vlgmr.msra.gmra.mxu2 %v4408_v17 }
 0x285   :  { %2143 = vmatpush.bf16.msrb.mxu1 %v3453_v22  ;;  %2156 = vmatpush.bf16.msrb.mxu2 %v3457_v23  ;;  %v3592_v22 = vld [vmem:[%s5478_s9 + $0x198] sm:$0xf0]  ;;  %v2881_v23 = vor.u32 %v3622_v15, %v2880_v14  ;;  %v3246_v14 = vld [vmem:[%s5478_s9 + $0x554] sm:$0xf0] }
 0x286   :  { %2169 = vmatpush.bf16.msrb.mxu3 %v3461_v26  ;;  %2182 = vmatpush.bf16.msra.mxu0 %v3465_v27  ;;  %v2758_v26 = vld [vmem:[%s5478_s9 + $0x19c] sm:$0xf0]  ;;  %v2764_v27 = vld [vmem:[%s5478_s9 + $0x130] sm:$0xf]  ;;  %v2757_v32 = vor.u32 %v3592_v22, %v2756_v21  ;;  %v3249_v21 = vor.u32 %v3697_v13, %v3246_v14  ;;  %v3667_v22 = vld [vmem:[%s5478_s9 + $0x3f4] sm:$0xf] }
 0x287   :  { %2125 = vmatmul.bf16.vlgmr.msra.gmra.mxu3 %v4408_v17  ;;  %2138 = vmatmul.bf16.vlgmr.msrb.gmra.mxu0 %v4408_v17  ;;  %v2761_v33 = vor.u32 %v3578_v25, %v2758_v26  ;;  %v2765_v37 = vor.u32 %v3593_v28, %v2764_v27  ;;  %v3682_v25 = vld [vmem:[%s5478_s9 + $0x468] sm:$0xf0]  ;;  %v3668_v26 = vld [vmem:[%s5478_s9 + $0x3fc] sm:$0xf]  ;;  %v3130_v27 = vld [vmem:[%s5478_s9 + $0x46c] sm:$0xf0] }
 0x288   :  { %v3770_v13 = vld [vmem:[%s5478_s9 + $0x728] sm:$0xf0]  ;;  %v3756_v14 = vld [vmem:[%s5478_s9 + $0x6bc] sm:$0xf] }
 0x289   :  { %2144 = vmatpush.bf16.msrb.mxu1 %v3337_v34  ;;  %2157 = vmatpush.bf16.msrb.mxu2 %v3341_v35  ;;  %v3563_v34 = vld [vmem:[%s5478_s9 + $0xb0] sm:$0xf0]  ;;  %v3549_v35 = vld [vmem:[%s5478_s9 + $0x44] sm:$0xf] }
 0x28a   :  { %2170 = vmatpush.bf16.msrb.mxu3 %v3345_v38  ;;  %2183 = vmatpush.bf16.msra.mxu0 %v3349_v39  ;;  %v2769_v38 = vor.u32 %v3579_v29, %v2766_v30  ;;  %v2648_v39 = vld [vmem:[%s5478_s9 + $0x48] sm:$0xf]  ;;  %v2641_v48 = vor.u32 %v3563_v34, %v2640_v31  ;;  %v2645_v49 = vor.u32 %v3549_v35, %v2642_v36  ;;  %v3652_v31 = vld [vmem:[%s5478_s9 + $0x378] sm:$0xf0]  ;;  %v3638_v34 = vld [vmem:[%s5478_s9 + $0x30c] sm:$0xf] }
 0x28b   :  { %v2649_v53 = vor.u32 %v3564_v40, %v2648_v39  ;;  %v3004_v30 = vld [vmem:[%s5478_s9 + $0x308] sm:$0xf]  ;;  %v3006_v35 = vld [vmem:[%s5478_s9 + $0x37c] sm:$0xf0]  ;;  %v3012_v36 = vld [vmem:[%s5478_s9 + $0x310] sm:$0xf] }
 0x28c   :  { %v3014_v39 = vld [vmem:[%s5478_s9 + $0x384] sm:$0xf0]  ;;  %v3005_v40 = vor.u32 %v3652_v31, %v3004_v30  ;;  %v3009_v41 = vor.u32 %v3638_v34, %v3006_v35  ;;  %v3727_v31 = vld [vmem:[%s5478_s9 + $0x5d4] sm:$0xf]  ;;  %v3742_v34 = vld [vmem:[%s5478_s9 + $0x648] sm:$0xf0] }
 0x28d   :  { %2145 = vmatpush.bf16.msrb.mxu1 %v3221_v46  ;;  %2158 = vmatpush.bf16.msrb.mxu2 %v3225_v47  ;;  %v3470_v46 = vld [vmem:[%s5478_s9 + $0x71c] sm:$0xf0]  ;;  %v3476_v47 = vld [vmem:[%s5478_s9 + $0x6b0] sm:$0xf]  ;;  %v3728_v35 = vld [vmem:[%s5478_s9 + $0x5dc] sm:$0xf] }
 0x28e   :  { %2171 = vmatpush.bf16.msrb.mxu3 %v3229_v50  ;;  %2184 = vmatpush.bf16.msra.mxu0 %v3233_v51  ;;  %v3769_v50 = vld [vmem:[%s5478_s9 + $0x720] sm:$0xf0]  ;;  %v3755_v51 = vld [vmem:[%s5478_s9 + $0x6b4] sm:$0xf]  ;;  %v3473_v56 = vor.u32 %v3754_v45, %v3470_v46 }
 0x28f   :  { %v3481_v60 = vor.u32 %v3755_v51, %v3478_v52  ;;  %v3609_v46 = vld [vmem:[%s5478_s9 + $0x224] sm:$0xf]  ;;  %v2898_v51 = vld [vmem:[%s5478_s9 + $0x29c] sm:$0xf0]  ;;  %v2889_v52 = vor.u32 %v3623_v43, %v2888_v42 }
 0x291   :  { %2146 = vmatpush.bf16.msrb.mxu1 %v3105_v58  ;;  %2159 = vmatpush.bf16.msrb.mxu2 %v3109_v59  ;;  %v3739_v58 = vld [vmem:[%s5478_s9 + $0x630] sm:$0xf0]  ;;  %v3477_v59 = vor.u32 %v3769_v50, %v3476_v47  ;;  %v2890_v47 = vld [vmem:[%s5478_s9 + $0x294] sm:$0xf0]  ;;  %v3610_v50 = vld [vmem:[%s5478_s9 + $0x22c] sm:$0xf] }
 0x292   :  { %2172 = vmatpush.bf16.msrb.mxu3 %v3113_v62  ;;  %2185 = vmatpush.bf16.msra.mxu0 %v3117_v63  ;;  %v3354_v62 = vld [vmem:[%s5478_s9 + $0x634] sm:$0xf0]  ;;  %v3360_v63 = vld [vmem:[%s5478_s9 + $0x5c8] sm:$0xf]  ;;  %v3353_v3 = vor.u32 %v3739_v58, %v3352_v57  ;;  %v2901_v57 = vor.u32 %v3610_v50, %v2898_v51  ;;  %v3580_v58 = vld [vmem:[%s5478_s9 + $0x13c] sm:$0xf] }
 0x293   :  { %v3357_v4 = vor.u32 %v3725_v61, %v3354_v62  ;;  %v3595_v61 = vld [vmem:[%s5478_s9 + $0x1b0] sm:$0xf0]  ;;  %v3581_v62 = vld [vmem:[%s5478_s9 + $0x144] sm:$0xf] }
 0x295   :  { %2147 = vmatpush.bf16.msrb.mxu1 %v2989_v6  ;;  %2160 = vmatpush.bf16.msrb.mxu2 %v2993_v7  ;;  %v3710_v6 = vld [vmem:[%s5478_s9 + $0x548] sm:$0xf0]  ;;  %v3361_v7 = vor.u32 %v3740_v0, %v3360_v63  ;;  %v2782_v63 = vld [vmem:[%s5478_s9 + $0x1b4] sm:$0xf0]  ;;  %v2656_v0 = vld [vmem:[%s5478_s9 + $0x50] sm:$0xf] }
 0x296   :  { %2173 = vmatpush.bf16.msrb.mxu3 %v2997_v10  ;;  %2186 = vmatpush.bf16.msra.mxu0 %v3001_v11  ;;  %v3238_v10 = vld [vmem:[%s5478_s9 + $0x54c] sm:$0xf0]  ;;  %v3244_v11 = vld [vmem:[%s5478_s9 + $0x4e0] sm:$0xf]  ;;  %v3237_v15 = vor.u32 %v3710_v6, %v3236_v5  ;;  %v2658_v5 = vld [vmem:[%s5478_s9 + $0xc4] sm:$0xf0] }
 0x297   :  { %v3241_v16 = vor.u32 %v3696_v9, %v3238_v10  ;;  %v3566_v9 = vld [vmem:[%s5478_s9 + $0xc8] sm:$0xf0]  ;;  %v3552_v10 = vld [vmem:[%s5478_s9 + $0x5c] sm:$0xf] }
 0x299   :  { %2148 = vmatpush.bf16.msrb.mxu1 %v2873_v19  ;;  %2161 = vmatpush.bf16.msrb.mxu2 %v2877_v20  ;;  %v3681_v19 = vld [vmem:[%s5478_s9 + $0x460] sm:$0xf0]  ;;  %v3245_v20 = vor.u32 %v3711_v12, %v3244_v11  ;;  %v2666_v11 = vld [vmem:[%s5478_s9 + $0xcc] sm:$0xf0]  ;;  %v3484_v12 = vld [vmem:[%s5478_s9 + $0x6b8] sm:$0xf] }
 0x29a   :  { %2174 = vmatpush.bf16.msrb.mxu3 %v2881_v23  ;;  %2187 = vmatpush.bf16.msra.mxu0 %v2885_v24  ;;  %v3122_v23 = vld [vmem:[%s5478_s9 + $0x464] sm:$0xf0]  ;;  %v3128_v24 = vld [vmem:[%s5478_s9 + $0x3f8] sm:$0xf]  ;;  %v3121_v28 = vor.u32 %v3681_v19, %v3120_v18 }
 0x29b   :  { %v3125_v29 = vor.u32 %v3667_v22, %v3122_v23  ;;  %v3494_v22 = vld [vmem:[%s5478_s9 + $0x734] sm:$0xf0] }
 0x29d   :  { %2149 = vmatpush.bf16.msrb.mxu1 %v2757_v32  ;;  %2162 = vmatpush.bf16.msrb.mxu2 %v2761_v33  ;;  %v3129_v32 = vor.u32 %v3682_v25, %v3128_v24  ;;  %v3133_v33 = vor.u32 %v3668_v26, %v3130_v27  ;;  %v2669_v24 = vor.u32 %v3552_v10, %v2666_v11  ;;  %v3368_v27 = vld [vmem:[%s5478_s9 + $0x5d0] sm:$0xf] }
 0x29e   :  { %2175 = vmatpush.bf16.msrb.mxu3 %v2765_v37  ;;  %2188 = vmatpush.bf16.msra.mxu0 %v2769_v38  ;;  %v3653_v37 = vld [vmem:[%s5478_s9 + $0x380] sm:$0xf0]  ;;  %v3639_v38 = vld [vmem:[%s5478_s9 + $0x314] sm:$0xf]  ;;  %v3485_v25 = vor.u32 %v3770_v13, %v3484_v12  ;;  %v3640_v12 = vld [vmem:[%s5478_s9 + $0x31c] sm:$0xf] }
 0x29f   :  { %v3013_v44 = vor.u32 %v3653_v37, %v3012_v36  ;;  %v3017_v45 = vor.u32 %v3639_v38, %v3014_v39  ;;  %v3378_v36 = vld [vmem:[%s5478_s9 + $0x64c] sm:$0xf0]  ;;  %v3252_v39 = vld [vmem:[%s5478_s9 + $0x4e8] sm:$0xf] }
 0x2a0   :  { %v3381_v43 = vor.u32 %v3728_v35, %v3378_v36  ;;  %v3022_v13 = vld [vmem:[%s5478_s9 + $0x38c] sm:$0xf0]  ;;  %v2906_v35 = vld [vmem:[%s5478_s9 + $0x2a4] sm:$0xf0]  ;;  %v2912_v36 = vld [vmem:[%s5478_s9 + $0x238] sm:$0xf] }
 0x2a1   :  { %2150 = vmatpush.bf16.msrb.mxu1 %v2641_v48  ;;  %2163 = vmatpush.bf16.msrb.mxu2 %v2645_v49  ;;  %v2896_v48 = vld [vmem:[%s5478_s9 + $0x228] sm:$0xf]  ;;  %v3624_v49 = vld [vmem:[%s5478_s9 + $0x298] sm:$0xf0] }
 0x2a2   :  { %2176 = vmatpush.bf16.msrb.mxu3 %v2649_v53  ;;  %2189 = vmatpush.bf16.msra.mxu0 %v2653_v54  ;;  %v2893_v53 = vor.u32 %v3609_v46, %v2890_v47  ;;  %v2772_v54 = vld [vmem:[%s5478_s9 + $0x138] sm:$0xf]  ;;  %v3260_v46 = vld [vmem:[%s5478_s9 + $0x4f0] sm:$0xf]  ;;  %v3713_v47 = vld [vmem:[%s5478_s9 + $0x560] sm:$0xf0] }
 0x2a4   :  { %2151 = vmatmul.bf16.vlgmr.msrb.gmra.mxu1 %v4408_v17  ;;  %2164 = vmatmul.bf16.vlgmr.msrb.gmra.mxu2 %v4408_v17 }
 0x2a5   :  { %2195 = vmatpush.bf16.msra.mxu1 %v3469_v55  ;;  %2208 = vmatpush.bf16.msra.mxu2 %v3473_v56  ;;  %v3594_v55 = vld [vmem:[%s5478_s9 + $0x1a8] sm:$0xf0]  ;;  %v2897_v56 = vor.u32 %v3624_v49, %v2896_v48  ;;  %v3699_v48 = vld [vmem:[%s5478_s9 + $0x4f4] sm:$0xf]  ;;  %v3262_v49 = vld [vmem:[%s5478_s9 + $0x564] sm:$0xf0] }
 0x2a6   :  { %2221 = vmatpush.bf16.msra.mxu3 %v3477_v59  ;;  %2234 = vmatpush.bf16.msrb.mxu0 %v3481_v60  ;;  %v2774_v59 = vld [vmem:[%s5478_s9 + $0x1ac] sm:$0xf0]  ;;  %v2780_v60 = vld [vmem:[%s5478_s9 + $0x140] sm:$0xf]  ;;  %v2773_v1 = vor.u32 %v3594_v55, %v2772_v54 }
 0x2a7   :  { %2177 = vmatmul.bf16.vlgmr.msrb.gmra.mxu3 %v4408_v17  ;;  %2190 = vmatmul.bf16.vlgmr.msra.gmra.mxu0 %v4408_v17  ;;  %v2777_v2 = vor.u32 %v3580_v58, %v2774_v59  ;;  %v2781_v6 = vor.u32 %v3595_v61, %v2780_v60  ;;  %v3136_v55 = vld [vmem:[%s5478_s9 + $0x400] sm:$0xf]  ;;  %v3261_v58 = vor.u32 %v3713_v47, %v3260_v46  ;;  %v3138_v60 = vld [vmem:[%s5478_s9 + $0x474] sm:$0xf0]  ;;  %v3144_v61 = vld [vmem:[%s5478_s9 + $0x408] sm:$0xf] }
 0x2a8   :  { %v3265_v59 = vor.u32 %v3699_v48, %v3262_v49  ;;  %v2788_v46 = vld [vmem:[%s5478_s9 + $0x148] sm:$0xf]  ;;  %v3596_v47 = vld [vmem:[%s5478_s9 + $0x1b8] sm:$0xf0]  ;;  %v3582_v48 = vld [vmem:[%s5478_s9 + $0x14c] sm:$0xf] }
 0x2a9   :  { %2196 = vmatpush.bf16.msra.mxu1 %v3353_v3  ;;  %2209 = vmatpush.bf16.msra.mxu2 %v3357_v4  ;;  %v3565_v3 = vld [vmem:[%s5478_s9 + $0xc0] sm:$0xf0]  ;;  %v3551_v4 = vld [vmem:[%s5478_s9 + $0x54] sm:$0xf] }
 0x2aa   :  { %2222 = vmatpush.bf16.msra.mxu3 %v3361_v7  ;;  %2235 = vmatpush.bf16.msrb.mxu0 %v3365_v8  ;;  %v2785_v7 = vor.u32 %v3581_v62, %v2782_v63  ;;  %v2664_v8 = vld [vmem:[%s5478_s9 + $0x58] sm:$0xf]  ;;  %v2657_v18 = vor.u32 %v3565_v3, %v2656_v0  ;;  %v2661_v19 = vor.u32 %v3551_v4, %v2658_v5  ;;  %v3684_v62 = vld [vmem:[%s5478_s9 + $0x478] sm:$0xf0]  ;;  %v3670_v63 = vld [vmem:[%s5478_s9 + $0x40c] sm:$0xf] }
 0x2ab   :  { %v2665_v23 = vor.u32 %v3566_v9, %v2664_v8  ;;  %v3146_v0 = vld [vmem:[%s5478_s9 + $0x47c] sm:$0xf0]  ;;  %v3145_v9 = vor.u32 %v3684_v62, %v3144_v61 }
 0x2ac   :  { %v3149_v10 = vor.u32 %v3670_v63, %v3146_v0  ;;  %v2672_v63 = vld [vmem:[%s5478_s9 + $0x60] sm:$0xf]  ;;  %v3567_v0 = vld [vmem:[%s5478_s9 + $0xd0] sm:$0xf0] }
 0x2ad   :  { %2197 = vmatpush.bf16.msra.mxu1 %v3237_v15  ;;  %2210 = vmatpush.bf16.msra.mxu2 %v3241_v16  ;;  %v3486_v15 = vld [vmem:[%s5478_s9 + $0x72c] sm:$0xf0]  ;;  %v3492_v16 = vld [vmem:[%s5478_s9 + $0x6c0] sm:$0xf] }
 0x2ae   :  { %2223 = vmatpush.bf16.msra.mxu3 %v3245_v20  ;;  %2236 = vmatpush.bf16.msrb.mxu0 %v3249_v21  ;;  %v3771_v20 = vld [vmem:[%s5478_s9 + $0x730] sm:$0xf0]  ;;  %v3757_v21 = vld [vmem:[%s5478_s9 + $0x6c4] sm:$0xf]  ;;  %v3489_v26 = vor.u32 %v3756_v14, %v3486_v15  ;;  %v3028_v14 = vld [vmem:[%s5478_s9 + $0x320] sm:$0xf] }
 0x2af   :  { %v3497_v30 = vor.u32 %v3757_v21, %v3494_v22 }
 0x2b1   :  { %2198 = vmatpush.bf16.msra.mxu1 %v3121_v28  ;;  %2211 = vmatpush.bf16.msra.mxu2 %v3125_v29  ;;  %v3741_v28 = vld [vmem:[%s5478_s9 + $0x640] sm:$0xf0]  ;;  %v3493_v29 = vor.u32 %v3771_v20, %v3492_v16  ;;  %v3030_v20 = vld [vmem:[%s5478_s9 + $0x394] sm:$0xf0] }
 0x2b2   :  { %2224 = vmatpush.bf16.msra.mxu3 %v3129_v32  ;;  %2237 = vmatpush.bf16.msrb.mxu0 %v3133_v33  ;;  %v3370_v32 = vld [vmem:[%s5478_s9 + $0x644] sm:$0xf0]  ;;  %v3376_v33 = vld [vmem:[%s5478_s9 + $0x5d8] sm:$0xf]  ;;  %v3369_v37 = vor.u32 %v3741_v28, %v3368_v27  ;;  %v3025_v27 = vor.u32 %v3640_v12, %v3022_v13 }
 0x2b3   :  { %v3373_v38 = vor.u32 %v3727_v31, %v3370_v32  ;;  %v3377_v42 = vor.u32 %v3742_v34, %v3376_v33 }
 0x2b5   :  { %2199 = vmatpush.bf16.msra.mxu1 %v3005_v40  ;;  %2212 = vmatpush.bf16.msra.mxu2 %v3009_v41  ;;  %v3712_v40 = vld [vmem:[%s5478_s9 + $0x558] sm:$0xf0]  ;;  %v5231_v41 = vld [vmem:[%s5479_s10] sm:$0xff] }
 0x2b6   :  { %2225 = vmatpush.bf16.msra.mxu3 %v3013_v44  ;;  %2238 = vmatpush.bf16.msrb.mxu0 %v3017_v45  ;;  %v3698_v44 = vld [vmem:[%s5478_s9 + $0x4ec] sm:$0xf]  ;;  %v3254_v45 = vld [vmem:[%s5478_s9 + $0x55c] sm:$0xf0]  ;;  %v712_v51 = vperm.slane %v5231_v41, 3  ;;  %v709_v3 = vperm.slane %v5231_v41, 0 }
 0x2b7   :  { %v715_v12 = vperm.slane %v5231_v41, 6  ;;  %v713_v13 = vperm.slane %v5231_v41, 4 }
 0x2b9   :  { %2200 = vmatpush.bf16.msra.mxu1 %v2889_v52  ;;  %2213 = vmatpush.bf16.msra.mxu2 %v2893_v53  ;;  %v3253_v52 = vor.u32 %v3712_v40, %v3252_v39  ;;  %v3257_v53 = vor.u32 %v3698_v44, %v3254_v45  ;;  %v3612_v39 = vld [vmem:[%s5478_s9 + $0x23c] sm:$0xf]  ;;  %v2914_v40 = vld [vmem:[%s5478_s9 + $0x2ac] sm:$0xf0] }
 0x2ba   :  { %2226 = vmatpush.bf16.msra.mxu3 %v2897_v56  ;;  %2239 = vmatpush.bf16.msrb.mxu0 %v2901_v57  ;;  %v3683_v56 = vld [vmem:[%s5478_s9 + $0x470] sm:$0xf0]  ;;  %v3669_v57 = vld [vmem:[%s5478_s9 + $0x404] sm:$0xf] }
 0x2bb   :  { %v3137_v4 = vor.u32 %v3683_v56, %v3136_v55  ;;  %v3141_v5 = vor.u32 %v3669_v57, %v3138_v60  ;;  %v3597_v55 = vld [vmem:[%s5478_s9 + $0x1c0] sm:$0xf0]  ;;  %v3583_v56 = vld [vmem:[%s5478_s9 + $0x154] sm:$0xf]  ;;  %v2798_v57 = vld [vmem:[%s5478_s9 + $0x1c4] sm:$0xf0]  ;;  %v2789_v60 = vor.u32 %v3596_v47, %v2788_v46 }
 0x2bd   :  { %2201 = vmatpush.bf16.msra.mxu1 %v2773_v1  ;;  %2214 = vmatpush.bf16.msra.mxu2 %v2777_v2  ;;  %v710_v1 = vperm.slane %v5231_v41, 1  ;;  %v711_v2 = vperm.slane %v5231_v41, 2 }
 0x2be   :  { %2227 = vmatpush.bf16.msra.mxu3 %v2781_v6  ;;  %2240 = vmatpush.bf16.msrb.mxu0 %v2785_v7  ;;  %v3020_v6 = vld [vmem:[%s5478_s9 + $0x318] sm:$0xf]  ;;  %v3654_v7 = vld [vmem:[%s5478_s9 + $0x388] sm:$0xf0] }
 0x2c0   :  { %v1944_v50 = vpop.f32.mrf.mxu1 }
 0x2c1   :  { %2202 = vmatpush.bf16.msra.mxu1 %v2657_v18  ;;  %2215 = vmatpush.bf16.msra.mxu2 %v2661_v19  ;;  %v1983_v54 = vpop.f32.mrf.mxu0  ;;  %v3655_v18 = vld [vmem:[%s5478_s9 + $0x390] sm:$0xf0]  ;;  %v3641_v19 = vld [vmem:[%s5478_s9 + $0x324] sm:$0xf] }
 0x2c2   :  { %2228 = vmatpush.bf16.msra.mxu3 %v2665_v23  ;;  %2241 = vmatpush.bf16.msrb.mxu0 %v2669_v24  ;;  %v1984_v8 = vadd.f32 %v1983_v54, %v712_v51  ;;  %v2904_v23 = vld [vmem:[%s5478_s9 + $0x230] sm:$0xf]  ;;  %v1945_v24 = vadd.f32 %v1944_v50, %v709_v3  ;;  %v3029_v33 = vor.u32 %v3655_v18, %v3028_v14 }
 0x2c3   :  { %v3033_v34 = vor.u32 %v3641_v19, %v3030_v20  ;;  %v2917_v50 = vor.u32 %v3612_v39, %v2914_v40  ;;  %v2801_v3 = vor.u32 %v3583_v56, %v2798_v57  ;;  %v2673_v14 = vor.u32 %v3567_v0, %v2672_v63  ;;  %v2920_v57 = vld [vmem:[%s5478_s9 + $0x240] sm:$0xf] }
 0x2c4   :  { %2203 = vmatmul.bf16.vlgmr.msra.gmra.mxu1 %v4408_v17  ;;  %2216 = vmatmul.bf16.vlgmr.msra.gmra.mxu2 %v4408_v17  ;;  %v2342_v31 = vrot.slane %v1984_v8, 2  ;;  %v2682_v8 = vld [vmem:[%s5478_s9 + $0xdc] sm:$0xf0] }
 0x2c5   :  { %2247 = vmatpush.bf16.msrb.mxu1 %v3485_v25  ;;  %2260 = vmatpush.bf16.msrb.mxu2 %v3489_v26  ;;  %v3021_v26 = vor.u32 %v3654_v7, %v3020_v6  ;;  %v3568_v6 = vld [vmem:[%s5478_s9 + $0xd8] sm:$0xf0]  ;;  %v3554_v7 = vld [vmem:[%s5478_s9 + $0x6c] sm:$0xf] }
 0x2c6   :  { %2273 = vmatpush.bf16.msrb.mxu3 %v3493_v29  ;;  %2286 = vmatpush.bf16.msra.mxu0 %v3497_v30  ;;  %v1957_v11 = vpop.f32.mrf.mxu2  ;;  %v3625_v29 = vld [vmem:[%s5478_s9 + $0x2a0] sm:$0xf0]  ;;  %v3611_v30 = vld [vmem:[%s5478_s9 + $0x234] sm:$0xf]  ;;  %v2685_v19 = vor.u32 %v3554_v7, %v2682_v8 }
 0x2c7   :  { %2229 = vmatmul.bf16.vlgmr.msra.gmra.mxu3 %v4408_v17  ;;  %2242 = vmatmul.bf16.vlgmr.msrb.gmra.mxu0 %v4408_v17  ;;  %v1958_v15 = vadd.f32 %v1957_v11, %v710_v1  ;;  %v1970_v16 = vpop.f32.mrf.mxu3  ;;  %v2905_v44 = vor.u32 %v3625_v29, %v2904_v23  ;;  %v2909_v45 = vor.u32 %v3611_v30, %v2906_v35  ;;  %v3553_v1 = vld [vmem:[%s5478_s9 + $0x64] sm:$0xf]  ;;  %v3772_v11 = vld [vmem:[%s5478_s9 + $0x738] sm:$0xf0]  ;;  %v3268_v35 = vld [vmem:[%s5478_s9 + $0x4f8] sm:$0xf] }
 0x2c8   :  { %v1971_v21 = vadd.f32 %v1970_v16, %v711_v2  ;;  %v1946_v22 = vpop.f32.mrf.mxu1 }
 0x2c9   :  { %2248 = vmatpush.bf16.msrb.mxu1 %v3369_v37  ;;  %2261 = vmatpush.bf16.msrb.mxu2 %v3373_v38  ;;  %v2340_v25 = vrot.slane %v1958_v15, 6  ;;  %v1985_v28 = vpop.f32.mrf.mxu0  ;;  %v3626_v38 = vld [vmem:[%s5478_s9 + $0x2a8] sm:$0xf0] }
 0x2ca   :  { %2274 = vmatpush.bf16.msrb.mxu3 %v3377_v42  ;;  %2287 = vmatpush.bf16.msra.mxu0 %v3381_v43  ;;  %v2341_v32 = vrot.slane %v1971_v21, 4  ;;  %v2913_v49 = vor.u32 %v3626_v38, %v2912_v36  ;;  %v3714_v36 = vld [vmem:[%s5478_s9 + $0x568] sm:$0xf0] }
 0x2cb   :  { %v2362_v37 = vsel %vm2361_vm2, %v1945_v24, %v2340_v25  ;;  %v3269_v39 = vor.u32 %v3714_v36, %v3268_v35 }
 0x2cc   :  { %v2364_v42 = vsel %vm2363_vm3, %v2341_v32, %v2342_v31 }
 0x2cd   :  { %2249 = vmatpush.bf16.msrb.mxu1 %v3253_v52  ;;  %2262 = vmatpush.bf16.msrb.mxu2 %v3257_v53  ;;  %v2366_v43 = vsel %vm2365_vm4, %v2362_v37, %v2364_v42  ;;  %v2790_v52 = vld [vmem:[%s5478_s9 + $0x1bc] sm:$0xf0]  ;;  %v2796_v53 = vld [vmem:[%s5478_s9 + $0x150] sm:$0xf] }
 0x2ce   :  { %2275 = vmatpush.bf16.msrb.mxu3 %v3261_v58  ;;  %2288 = vmatpush.bf16.msra.mxu0 %v3265_v59  ;;  %2392 = vst [vmem:[#allocation2] sm:$0xff] %v2366_v43  ;;  %v1959_v51 = vpop.f32.mrf.mxu2  ;;  %v716_v59 = vperm.slane %v5231_v41, 7  ;;  %v2793_v61 = vor.u32 %v3582_v48, %v2790_v52  ;;  %v2797_v2 = vor.u32 %v3597_v55, %v2796_v53  ;;  %v3152_v42 = vld [vmem:[%s5478_s9 + $0x410] sm:$0xf]  ;;  %v3685_v43 = vld [vmem:[%s5478_s9 + $0x480] sm:$0xf0] }
 0x2cf   :  { %v1972_v54 = vpop.f32.mrf.mxu3  ;;  %v3153_v47 = vor.u32 %v3685_v43, %v3152_v42 }
 0x2d0   :  { %v1996_v58 = vpop.f32.mrf.mxu1 }
 0x2d1   :  { %2250 = vmatpush.bf16.msrb.mxu1 %v3137_v4  ;;  %2263 = vmatpush.bf16.msrb.mxu2 %v3141_v5  ;;  %v2035_v62 = vpop.f32.mrf.mxu0  ;;  %v2674_v4 = vld [vmem:[%s5478_s9 + $0xd4] sm:$0xf0]  ;;  %v2680_v5 = vld [vmem:[%s5478_s9 + $0x68] sm:$0xf] }
 0x2d2   :  { %2276 = vmatpush.bf16.msrb.mxu3 %v3145_v9  ;;  %2289 = vmatpush.bf16.msra.mxu0 %v3149_v10  ;;  %v714_v9 = vperm.slane %v5231_v41, 5  ;;  %v3500_v10 = vld [vmem:[%s5478_s9 + $0x6c8] sm:$0xf]  ;;  %v2677_v15 = vor.u32 %v3553_v1, %v2674_v4  ;;  %v2036_v16 = vadd.f32 %v2035_v62, %v716_v59  ;;  %v2681_v18 = vor.u32 %v3568_v6, %v2680_v5  ;;  %v3743_v41 = vld [vmem:[%s5478_s9 + $0x650] sm:$0xf0] }
 0x2d3   :  { %v3501_v21 = vor.u32 %v3772_v11, %v3500_v10  ;;  %v2804_v5 = vld [vmem:[%s5478_s9 + $0x158] sm:$0xf]  ;;  %v3598_v6 = vld [vmem:[%s5478_s9 + $0x1c8] sm:$0xf0] }
 0x2d4   :  { %v2345_v30 = vrot.slane %v2036_v16, 2  ;;  %v2805_v10 = vor.u32 %v3598_v6, %v2804_v5 }
 0x2d5   :  { %2251 = vmatpush.bf16.msrb.mxu1 %v3021_v26  ;;  %2264 = vmatpush.bf16.msrb.mxu2 %v3025_v27  ;;  %v3384_v26 = vld [vmem:[%s5478_s9 + $0x5e0] sm:$0xf]  ;;  %v1997_v27 = vadd.f32 %v1996_v58, %v713_v13  ;;  %v3627_v58 = vld [vmem:[%s5478_s9 + $0x2b0] sm:$0xf0]  ;;  %v3569_v13 = vld [vmem:[%s5478_s9 + $0xe0] sm:$0xf0] }
 0x2d6   :  { %2277 = vmatpush.bf16.msrb.mxu3 %v3029_v33  ;;  %2290 = vmatpush.bf16.msra.mxu0 %v3033_v34  ;;  %v2009_v20 = vpop.f32.mrf.mxu2  ;;  %v3385_v33 = vor.u32 %v3743_v41, %v3384_v26 }
 0x2d7   :  { %v2010_v22 = vadd.f32 %v2009_v20, %v714_v9  ;;  %v2022_v23 = vpop.f32.mrf.mxu3 }
 0x2d8   :  { %v2023_v24 = vadd.f32 %v2022_v23, %v715_v12  ;;  %v1998_v25 = vpop.f32.mrf.mxu1  ;;  %v2688_v12 = vld [vmem:[%s5478_s9 + $0x70] sm:$0xf] }
 0x2d9   :  { %2252 = vmatpush.bf16.msrb.mxu1 %v2905_v44  ;;  %2265 = vmatpush.bf16.msrb.mxu2 %v2909_v45  ;;  %v2343_v28 = vrot.slane %v2010_v22, 6  ;;  %v2037_v29 = vpop.f32.mrf.mxu0  ;;  %v702_v44 = vld [vmem:[%s5479_s10 + $0x8] sm:$0xff] }
 0x2da   :  { %2278 = vmatpush.bf16.msrb.mxu3 %v2913_v49  ;;  %2291 = vmatpush.bf16.msra.mxu0 %v2917_v50  ;;  %v2344_v31 = vrot.slane %v2023_v24, 4  ;;  %v720_v48 = vperm.slane %v702_v44, 3  ;;  %v3036_v49 = vld [vmem:[%s5478_s9 + $0x328] sm:$0xf]  ;;  %v3656_v50 = vld [vmem:[%s5478_s9 + $0x398] sm:$0xf0] }
 0x2db   :  { %v2367_v32 = vsel %vm2361_vm2, %v1997_v27, %v2343_v28  ;;  %v718_v51 = vperm.slane %v702_v44, 1  ;;  %v719_v52 = vperm.slane %v702_v44, 2  ;;  %v717_v53 = vperm.slane %v702_v44, 0 }
 0x2dc   :  { %v2368_v34 = vsel %vm2363_vm3, %v2344_v31, %v2345_v30  ;;  %v3037_v54 = vor.u32 %v3656_v50, %v3036_v49  ;;  %v722_v20 = vperm.slane %v702_v44, 5  ;;  %v721_v22 = vperm.slane %v702_v44, 4 }
 0x2dd   :  { %2253 = vmatpush.bf16.msrb.mxu1 %v2789_v60  ;;  %2266 = vmatpush.bf16.msrb.mxu2 %v2793_v61  ;;  %v2369_v37 = vsel %vm2365_vm4, %v2367_v32, %v2368_v34 }
 0x2de   :  { %2279 = vmatpush.bf16.msrb.mxu3 %v2797_v2  ;;  %2292 = vmatpush.bf16.msra.mxu0 %v2801_v3  ;;  %2393 = vst [vmem:[#allocation2 + $0x8] sm:$0xff] %v2369_v37  ;;  %v2011_v38 = vpop.f32.mrf.mxu2  ;;  %v2921_v2 = vor.u32 %v3627_v58, %v2920_v57  ;;  %v703_v37 = vld [vmem:[%s5479_s10 + $0x10] sm:$0xff] }
 0x2df   :  { %v2024_v40 = vpop.f32.mrf.mxu3  ;;  %v726_v42 = vperm.slane %v703_v37, 1  ;;  %v727_v43 = vperm.slane %v703_v37, 2 }
 0x2e0   :  { %v728_v40 = vperm.slane %v703_v37, 3 }
 0x2e1   :  { %2254 = vmatpush.bf16.msrb.mxu1 %v2673_v14  ;;  %2267 = vmatpush.bf16.msrb.mxu2 %v2677_v15  ;;  %v2048_v45 = vpop.f32.mrf.mxu1  ;;  %v2689_v15 = vor.u32 %v3569_v13, %v2688_v12 }
 0x2e2   :  { %2280 = vmatpush.bf16.msrb.mxu3 %v2681_v18  ;;  %2293 = vmatpush.bf16.msra.mxu0 %v2685_v19  ;;  %v2049_v63 = vadd.f32 %v2048_v45, %v717_v53  ;;  %v724_v19 = vperm.slane %v702_v44, 7 }
 0x2e4   :  { %2255 = vmatmul.bf16.vlgmr.msrb.gmra.mxu1 %v4408_v17  ;;  %2268 = vmatmul.bf16.vlgmr.msrb.gmra.mxu2 %v4408_v17  ;;  %v2087_v46 = vpop.f32.mrf.mxu0 }
 0x2e5   :  { %2299 = vmatpush.bf16.msra.mxu1 %v3501_v21  ;;  %2281 = vmatmul.bf16.vlgmr.msrb.gmra.mxu3 %v4408_v17  ;;  %v2088_v55 = vadd.f32 %v2087_v46, %v720_v48  ;;  %v723_v21 = vperm.slane %v702_v44, 6  ;;  %v725_v44 = vperm.slane %v703_v37, 0 }
 0x2e6   :  { %2294 = vmatmul.bf16.vlgmr.msra.gmra.mxu0 %v4408_v17 }
 0x2e7   :  { %v2061_v56 = vpop.f32.mrf.mxu2  ;;  %v2348_v3 = vrot.slane %v2088_v55, 2 }
 0x2e8   :  { %v2062_v59 = vadd.f32 %v2061_v56, %v718_v51 }
 0x2e9   :  { %2300 = vmatpush.bf16.msra.mxu1 %v3385_v33  ;;  %v2050_v62 = vpop.f32.mrf.mxu1 }
 0x2ea   :  { %v2074_v60 = vpop.f32.mrf.mxu3  ;;  %v2346_v0 = vrot.slane %v2062_v59, 6 }
 0x2eb   :  { %v2075_v61 = vadd.f32 %v2074_v60, %v719_v52 }
 0x2ec   :  { %v2089_v1 = vpop.f32.mrf.mxu0  ;;  %v2370_v7 = vsel %vm2361_vm2, %v2049_v63, %v2346_v0  ;;  %v732_v63 = vperm.slane %v703_v37, 7  ;;  %v730_v0 = vperm.slane %v703_v37, 5 }
 0x2ed   :  { %2301 = vmatpush.bf16.msra.mxu1 %v3269_v39  ;;  %v2347_v4 = vrot.slane %v2075_v61, 4  ;;  %v731_v1 = vperm.slane %v703_v37, 6 }
 0x2ef   :  { %v2371_v8 = vsel %vm2363_vm3, %v2347_v4, %v2348_v3  ;;  %v2063_v11 = vpop.f32.mrf.mxu2 }
 0x2f0   :  { %v2372_v9 = vsel %vm2365_vm4, %v2370_v7, %v2371_v8 }
 0x2f1   :  { %2302 = vmatpush.bf16.msra.mxu1 %v3153_v47  ;;  %2394 = vst [vmem:[#allocation2 + $0x10] sm:$0xff] %v2372_v9 }
 0x2f2   :  { %v2076_v14 = vpop.f32.mrf.mxu3 }
 0x2f5   :  { %2303 = vmatpush.bf16.msra.mxu1 %v3037_v54 }
 0x2f9   :  { %2304 = vmatpush.bf16.msra.mxu1 %v2921_v2  ;;  %v729_v2 = vperm.slane %v703_v37, 4 }
 0x2fd   :  { %2305 = vmatpush.bf16.msra.mxu1 %v2805_v10 }
 0x301   :  { %2306 = vmatpush.bf16.msra.mxu1 %v2689_v15  ;;  %v2100_v16 = vpop.f32.mrf.mxu1 }
 0x302   :  { %v2101_v28 = vadd.f32 %v2100_v16, %v721_v22 }
 0x304   :  { %2307 = vmatmul.bf16.vlgmr.msra.gmra.mxu1 %v4408_v17  ;;  %v2139_v18 = vpop.f32.mrf.mxu0 }
 0x305   :  { %v2140_v23 = vadd.f32 %v2139_v18, %v724_v19 }
 0x307   :  { %v2113_v24 = vpop.f32.mrf.mxu2  ;;  %v2351_v31 = vrot.slane %v2140_v23, 2 }
 0x308   :  { %v2114_v25 = vadd.f32 %v2113_v24, %v722_v20  ;;  %v704_v20 = vld [vmem:[%s5479_s10 + $0x18] sm:$0x1f]  ;;  %s3804_s10 = smov [#allocation2]  }
 0x309   :  { %v2102_v27 = vpop.f32.mrf.mxu1  ;;  %v736_v23 = vperm.slane %v704_v20, 3  ;;  %v734_v24 = vperm.slane %v704_v20, 1  ;;  %s2406_s17 = sshll.u32 %s3804_s10, 4  ;;  %s2407_s17 = int_to_ptr.vmem [resolvable:$true] %s2406_s17 }
 0x30a   :  { %v2126_v26 = vpop.f32.mrf.mxu3  ;;  %v2349_v29 = vrot.slane %v2114_v25, 6  ;;  %v735_v25 = vperm.slane %v704_v20, 2 }
 0x30b   :  { %v2127_v41 = vadd.f32 %v2126_v26, %v723_v21  ;;  %v733_v26 = vperm.slane %v704_v20, 0 }
 0x30c   :  { %v2141_v30 = vpop.f32.mrf.mxu0  ;;  %v2373_v33 = vsel %vm2361_vm2, %v2101_v28, %v2349_v29 }
 0x30d   :  { %v2350_v32 = vrot.slane %v2127_v41, 4 }
 0x30f   :  { %v2374_v17 = vsel %vm2363_vm3, %v2350_v32, %v2351_v31  ;;  %v2115_v35 = vpop.f32.mrf.mxu2 }
 0x310   :  { %v2375_v34 = vsel %vm2365_vm4, %v2373_v33, %v2374_v17 }
 0x311   :  { %2395 = vst [vmem:[#allocation2 + $0x18] sm:$0xff] %v2375_v34 }
 0x312   :  { %v2128_v36 = vpop.f32.mrf.mxu3 }
 0x321   :  { %v2152_v38 = vpop.f32.mrf.mxu1 }
 0x322   :  { %v2153_v51 = vadd.f32 %v2152_v38, %v725_v44 }
 0x324   :  { %v2191_v39 = vpop.f32.mrf.mxu0 }
 0x325   :  { %v2192_v45 = vadd.f32 %v2191_v39, %v728_v40 }
 0x327   :  { %v2165_v46 = vpop.f32.mrf.mxu2  ;;  %v2354_v54 = vrot.slane %v2192_v45, 2 }
 0x328   :  { %v2166_v47 = vadd.f32 %v2165_v46, %v726_v42  ;;  %v737_v42 = vperm.slane %v704_v20, 4 }
 0x329   :  { %v2154_v50 = vpop.f32.mrf.mxu1 }
 0x32a   :  { %v2178_v48 = vpop.f32.mrf.mxu3  ;;  %v2352_v52 = vrot.slane %v2166_v47, 6 }
 0x32b   :  { %v2179_v49 = vadd.f32 %v2178_v48, %v727_v43 }
 0x32c   :  { %v2193_v53 = vpop.f32.mrf.mxu0  ;;  %v2376_v56 = vsel %vm2361_vm2, %v2153_v51, %v2352_v52 }
 0x32d   :  { %v2353_v55 = vrot.slane %v2179_v49, 4 }
 0x32f   :  { %v2377_v57 = vsel %vm2363_vm3, %v2353_v55, %v2354_v54  ;;  %v2167_v59 = vpop.f32.mrf.mxu2 }
 0x330   :  { %v2378_v58 = vsel %vm2365_vm4, %v2376_v56, %v2377_v57 }
 0x331   :  { %2396 = vst [vmem:[#allocation2 + $0x20] sm:$0xff] %v2378_v58 }
 0x332   :  { %v2180_v60 = vpop.f32.mrf.mxu3 }
 0x341   :  { %v2204_v61 = vpop.f32.mrf.mxu1 }
 0x342   :  { %v2205_v9 = vadd.f32 %v2204_v61, %v729_v2 }
 0x344   :  { %v2243_v62 = vpop.f32.mrf.mxu0 }
 0x345   :  { %v2244_v3 = vadd.f32 %v2243_v62, %v732_v63 }
 0x347   :  { %v2217_v4 = vpop.f32.mrf.mxu2  ;;  %v2357_v12 = vrot.slane %v2244_v3, 2 }
 0x348   :  { %v2218_v5 = vadd.f32 %v2217_v4, %v730_v0 }
 0x349   :  { %v2206_v8 = vpop.f32.mrf.mxu1 }
 0x34a   :  { %v2230_v6 = vpop.f32.mrf.mxu3  ;;  %v2355_v10 = vrot.slane %v2218_v5, 6 }
 0x34b   :  { %v2231_v7 = vadd.f32 %v2230_v6, %v731_v1 }
 0x34c   :  { %v2245_v11 = vpop.f32.mrf.mxu0  ;;  %v2379_v14 = vsel %vm2361_vm2, %v2205_v9, %v2355_v10 }
 0x34d   :  { %v2356_v13 = vrot.slane %v2231_v7, 4 }
 0x34f   :  { %v2380_v15 = vsel %vm2363_vm3, %v2356_v13, %v2357_v12  ;;  %v2219_v18 = vpop.f32.mrf.mxu2 }
 0x350   :  { %v2381_v16 = vsel %vm2365_vm4, %v2379_v14, %v2380_v15 }
 0x351   :  { %2397 = vst [vmem:[#allocation2 + $0x28] sm:$0xff] %v2381_v16 }
 0x352   :  { %v2232_v19 = vpop.f32.mrf.mxu3 }
 0x361   :  { %v2256_v21 = vpop.f32.mrf.mxu1 }
 0x362   :  { %v2257_v32 = vadd.f32 %v2256_v21, %v733_v26 }
 0x363   :  { %v2295_v22 = vpop.f32.mrf.mxu0 }
 0x364   :  { %v2296_v41 = vadd.f32 %v2295_v22, %v736_v23 }
 0x366   :  { %v2360_v34 = vrot.slane %v2296_v41, 2 }
 0x367   :  { %v2269_v27 = vpop.f32.mrf.mxu2 }
 0x368   :  { %v2270_v28 = vadd.f32 %v2269_v27, %v734_v24  ;;  %v2282_v29 = vpop.f32.mrf.mxu3 }
 0x369   :  { %v2283_v30 = vadd.f32 %v2282_v29, %v735_v25  ;;  %v2258_v31 = vpop.f32.mrf.mxu1 }
 0x36a   :  { %v2358_v33 = vrot.slane %v2270_v28, 6 }
 0x36b   :  { %v2297_v17 = vpop.f32.mrf.mxu0  ;;  %v2359_v35 = vrot.slane %v2283_v30, 4 }
 0x36c   :  { %v2382_v36 = vsel %vm2361_vm2, %v2257_v32, %v2358_v33 }
 0x36d   :  { %v2383_v37 = vsel %vm2363_vm3, %v2359_v35, %v2360_v34 }
 0x36e   :  { %v2384_v38 = vsel %vm2365_vm4, %v2382_v36, %v2383_v37 }
 0x36f   :  { %2398 = vst [vmem:[#allocation2 + $0x30] sm:$0xff] %v2384_v38  ;;  %v2271_v39 = vpop.f32.mrf.mxu2 }
 0x370   :  { %v2284_v40 = vpop.f32.mrf.mxu3 }
 0x381   :  { %v2308_v43 = vpop.f32.mrf.mxu1 }
 0x382   :  { %v2309_v44 = vadd.f32 %v2308_v43, %v737_v42 }
 0x384   :  { %2400 = vst.msk [vmem:[#allocation2 + $0x38] sm:$0x3] %vm2399_vm5, %v2309_v44 }
 0x385   :  { %2411 = dma.vmem_to_hbm [thread:$0]  %s2407_s17, 928, %s2409_s4, [#allocation3]  }
 0x389   :  { %v2310_v45 = vpop.f32.mrf.mxu1 }
 0x38a   :  { %3802 = dma.done.wait [#allocation3], 928  }
 0x38b   :  { %3803 = vsyncadd [#allocation3], 4294966368 }
 0x38c   :  { %2416 = vsyncpa [#allocation3], 1 }

</bundles_post_ra>
